<compile_context>
chip_gen: v5e
topology: v5e:2x2
jax: 0.10.0
libtpu: 0.0.40
codegen_flags: <defaults>
</compile_context>

<pallas_src>
import functools
import math

import jax
import jax.numpy as jnp
from jax.experimental import pallas as pl
from jax.experimental.pallas import tpu as pltpu

LN_EPS = 1e-6


def _layernorm(x, gamma, beta):
    mu = jnp.mean(x, axis=-1, keepdims=True)
    var = jnp.mean((x - mu) ** 2, axis=-1, keepdims=True)
    return gamma * (x - mu) * jax.lax.rsqrt(var + LN_EPS) + beta


def _gelu_tanh(x):
    # BERT-style tanh-approximate GELU
    return 0.5 * x * (1.0 + jnp.tanh(math.sqrt(2.0 / math.pi) * (x + 0.044715 * x ** 3)))


def _polar_block_kernel(real_ref, img_ref, mask_ref,
                        wqkv_ref, wo_ref, w1_ref, w2_ref,
                        bqkv_ref, bo_ref, rot_ref, ln_ref, b1_ref, b2_ref,
                        out_r_ref, out_i_ref, *, num_heads, block_b, seq_len):
    f32 = jnp.float32
    bf16 = jnp.bfloat16
    Bb, S = block_b, seq_len
    R, H = real_ref.shape                    # R = Bb * S  (lane-dense 2-D block)
    dk = H // num_heads
    scale = 1.0 / math.sqrt(dk)

    real = real_ref[...]                      # (R, H) f32
    img = img_ref[...]                        # (R, H) f32
    ln = ln_ref[...]                          # (8, H)

    # ---- input_sublayer: LN(real), LN(img) -> polar attention -> residual ----
    nr = _layernorm(real, ln[0:1, :], ln[1:2, :])
    ni = _layernorm(img, ln[2:3, :], ln[3:4, :])

    # Fused Q/K/V projection for BOTH real & imag parts: one (2R,H)x(H,3H) dot.
    n_all = jnp.concatenate([nr, ni], axis=0).astype(bf16)             # (2R, H)
    qkv = jnp.dot(n_all, wqkv_ref[...],
                  preferred_element_type=f32) + bqkv_ref[...]          # (2R, 3H) f32
    qr, kr, vr = qkv[:R, 0:H], qkv[:R, H:2 * H], qkv[:R, 2 * H:3 * H]
    qi, ki, vi = qkv[R:, 0:H], qkv[R:, H:2 * H], qkv[R:, 2 * H:3 * H]

    # learnable polar rotation of the query (cos/sin precomputed host-side)
    c, s = rot_ref[0:1, :], rot_ref[1:2, :]
    qr2 = qr * c - qi * s
    qi2 = qr * s + qi * c

    # mask -> additive bias, computed ONCE and reused by every head (no nh-fold
    # replicated stack).
    neg_bias = jnp.where(mask_ref[...] > 0, 0.0, -1e9)                 # (Bb, S, S)

    # Per-head attention: real+imag fused into one contraction of depth 2*dk,
    # batched over Bb inside each einsum (single leading batch dim -> robust
    # Mosaic lowering).  Only one head's (Bb,S,S) score tensor is live at a time.
    ctx_r_parts = []
    ctx_i_parts = []
    for h in range(num_heads):
        sl = slice(h * dk, (h + 1) * dk)
        qh = jnp.concatenate([qr2[:, sl], qi2[:, sl]],
                             axis=-1).astype(bf16).reshape(Bb, S, 2 * dk)
        kh = jnp.concatenate([kr[:, sl], ki[:, sl]],
                             axis=-1).astype(bf16).reshape(Bb, S, 2 * dk)
        vh = jnp.concatenate([vr[:, sl], vi[:, sl]],
                             axis=-1).astype(bf16).reshape(Bb, S, 2 * dk)

        sc = jnp.einsum('bqd,bkd->bqk', qh, kh,
                        preferred_element_type=f32) * scale + neg_bias  # (Bb,S,S)
        m = jnp.max(sc, axis=-1, keepdims=True)
        e = jnp.exp(sc - m)
        attn = e * pl.reciprocal(jnp.sum(e, axis=-1, keepdims=True), approx=True)

        ctx_h = jnp.einsum('bqk,bkd->bqd', attn.astype(bf16), vh,
                           preferred_element_type=f32).reshape(R, 2 * dk)
        ctx_r_parts.append(ctx_h[:, 0:dk])
        ctx_i_parts.append(ctx_h[:, dk:2 * dk])

    ctx_r = jnp.concatenate(ctx_r_parts, axis=-1)                      # (R, H)
    ctx_i = jnp.concatenate(ctx_i_parts, axis=-1)                      # (R, H)

    # single output projection for both parts (Wo hoisted): (2R,H)x(H,H)
    ctx_all = jnp.concatenate([ctx_r, ctx_i], axis=0).astype(bf16)     # (2R, H)
    o_all = jnp.dot(ctx_all, wo_ref[...], preferred_element_type=f32) + bo_ref[...]
    real1 = real + o_all[:R]
    img1 = img + o_all[R:]

    # ---- output sublayers: x + FFN(LN(x)); both branches in one batched pass
    x_ffn = jnp.stack([_layernorm(real1, ln[4:5, :], ln[5:6, :]),
                       _layernorm(img1, ln[6:7, :], ln[7:8, :])],
                      axis=0).astype(bf16)                             # (2, R, H)
    h1 = jnp.einsum('brh,bhf->brf', x_ffn, w1_ref[...],
                    preferred_element_type=f32)                        # (2, R, Dff)
    h1 = _gelu_tanh(h1 + b1_ref[...][:, None, :]).astype(bf16)
    f_out = jnp.einsum('brf,bfh->brh', h1, w2_ref[...],
                       preferred_element_type=f32)                     # (2, R, H)
    f_out = f_out + b2_ref[...][:, None, :]

    out_r_ref[...] = real1 + f_out[0]
    out_i_ref[...] = img1 + f_out[1]


def _vmem_limit_bytes():
    cap = 128 * 1024 * 1024           # v5e/v6e fallback
    try:
        info = pltpu.get_tpu_info()
        cap = int(getattr(info, "vmem_capacity_bytes", cap))
    except Exception:
        pass
    # ~25% headroom for compiler scratch / semaphores / spill (matters on v7x's 64 MiB).
    return max(32 * 1024 * 1024, (cap * 3) // 4)


def _pick_block_b(B, S, H, Dff, num_heads, budget_bytes):
    # bf16 weights, single-buffered (pl.Buffered(1)) -> counted once
    weight_bytes = 2 * (3 * H * H + H * H + 2 * H * Dff + 2 * Dff * H)

    def fits(d):
        R = d * S
        act_io = 2 * 2 * 2 * R * H * 4      # real/img, in+out, double-buffered f32
        mask_b = 2 * d * S * S * 4          # dense mask, double-buffered
        qkv = 2 * R * 3 * H * 4             # fused projection output (f32)
        sc = 3 * d * S * S * 4              # one head's scores / exp / attn
        ffn = 2 * R * Dff * 6               # f32 activations + bf16 copy
        misc = 8 * R * H * 4                # residuals / LN / ctx temporaries
        return weight_bytes + act_io + mask_b + qkv + sc + ffn + misc <= budget_bytes

    divisors = [d for d in range(1, B + 1) if B % d == 0]
    good = [d for d in divisors if fits(d)] or [1]
    # keep >= 2 grid steps when possible so both v7x TensorCores get work
    two_step = [d for d in good if B // d >= 2]
    return max(two_step) if two_step else max(good)


def transformer_polar_block(real, img, mask, params, *, num_heads, rotate_lr,
                            block_b=None):
    B, S, H = real.shape
    Dff = params["w1"].shape[-1]
    f32 = jnp.float32
    bf16 = jnp.bfloat16

    # ---- host-side parameter preprocessing (one-time, outside the kernel) ----
    w_attn = params["w_attn"].astype(f32)            # (4, H, H): Wq, Wk, Wv, Wo
    w_qkv = jnp.concatenate([w_attn[0], w_attn[1], w_attn[2]], axis=1).astype(bf16)
    w_o = w_attn[3].astype(bf16)
    b_attn = params["b_attn"].astype(f32)            # (4, H)
    b_qkv = jnp.concatenate([b_attn[0], b_attn[1], b_attn[2]], axis=0)[None, :]
    b_o = b_attn[3][None, :]
    ang = rotate_lr * params["theta"].astype(f32)    # (1, H)
    rot = jnp.concatenate([jnp.cos(ang), jnp.sin(ang)], axis=0)       # (2, H)
    w1 = params["w1"].astype(bf16)                   # (2, H, Dff)
    w2 = params["w2"].astype(bf16)                   # (2, Dff, H)
    ln = params["ln"].astype(f32)                    # (8, H)
    b1 = params["b1"].astype(f32)                    # (2, Dff)
    b2 = params["b2"].astype(f32)                    # (2, H)

    vmem_limit = _vmem_limit_bytes()
    if block_b is None:
        block_b = _pick_block_b(B, S, H, Dff, num_heads, (vmem_limit * 7) // 10)
    assert B % block_b == 0

    # activations flattened host-side -> lane-dense 2-D blocks, unmasked stores
    real_flat = real.astype(f32).reshape(B * S, H)
    img_flat = img.astype(f32).reshape(B * S, H)

    kernel = functools.partial(_polar_block_kernel, num_heads=num_heads,
                               block_b=block_b, seq_len=S)

    grid_spec = pltpu.PrefetchScalarGridSpec(
        num_scalar_prefetch=0,
        grid=(B // block_b,),
        in_specs=[
            pl.BlockSpec((block_b * S, H), lambda b: (b, 0)),     # real (B*S, H)
            pl.BlockSpec((block_b * S, H), lambda b: (b, 0)),     # img  (B*S, H)
            pl.BlockSpec((block_b, S, S), lambda b: (b, 0, 0)),   # mask
            # constant weights: single-buffered (index_map is constant)
            pl.BlockSpec((H, 3 * H), lambda b: (0, 0),
                         pipeline_mode=pl.Buffered(1)),           # fused Wqkv
            pl.BlockSpec((H, H), lambda b: (0, 0),
                         pipeline_mode=pl.Buffered(1)),           # Wo
            pl.BlockSpec((2, H, Dff), lambda b: (0, 0, 0),
                         pipeline_mode=pl.Buffered(1)),           # FFN W1 x2
            pl.BlockSpec((2, Dff, H), lambda b: (0, 0, 0),
                         pipeline_mode=pl.Buffered(1)),           # FFN W2 x2
            pl.BlockSpec((1, 3 * H), lambda b: (0, 0)),           # fused b_qkv
            pl.BlockSpec((1, H), lambda b: (0, 0)),               # b_o
            pl.BlockSpec((2, H), lambda b: (0, 0)),               # rotation cos/sin
            pl.BlockSpec((8, H), lambda b: (0, 0)),               # layernorm params
            pl.BlockSpec((2, Dff), lambda b: (0, 0)),             # FFN b1
            pl.BlockSpec((2, H), lambda b: (0, 0)),               # FFN b2
        ],
        out_specs=[
            pl.BlockSpec((block_b * S, H), lambda b: (b, 0)),
            pl.BlockSpec((block_b * S, H), lambda b: (b, 0)),
        ],
    )
    out_r, out_i = pl.pallas_call(
        kernel,
        out_shape=(jax.ShapeDtypeStruct((B * S, H), f32),
                   jax.ShapeDtypeStruct((B * S, H), f32)),
        grid_spec=grid_spec,
        compiler_params=pltpu.CompilerParams(
            dimension_semantics=("parallel",),
            vmem_limit_bytes=vmem_limit,
        ),
    )(real_flat, img_flat, mask.astype(f32),
      w_qkv, w_o, w1, w2, b_qkv, b_o, rot, ln, b1, b2)
    return out_r.reshape(B, S, H), out_i.reshape(B, S, H)


def reference(real, img, mask, p, *, num_heads, rotate_lr):
    """Pure-JAX reference with identical math (high-precision f32 dots)."""
    hp = jax.lax.Precision.HIGHEST
    dot = functools.partial(jnp.dot, precision=hp)

    def one(real, img, mask):
        S, H = real.shape
        dk = H // num_heads
        ln = p["ln"]
        nr = _layernorm(real, ln[0:1], ln[1:2])
        ni = _layernorm(img, ln[2:3], ln[3:4])
        lin = lambda x, i: dot(x, p["w_attn"][i]) + p["b_attn"][i:i + 1]
        qr, qi = lin(nr, 0), lin(ni, 0)
        kr, ki = lin(nr, 1), lin(ni, 1)
        vr, vi = lin(nr, 2), lin(ni, 2)
        ang = rotate_lr * p["theta"]
        c, s = jnp.cos(ang), jnp.sin(ang)
        qr2, qi2 = qr * c - qi * s, qr * s + qi * c
        wo = p["w_attn"][3]
        o_r = jnp.zeros((S, H), jnp.float32)
        o_i = jnp.zeros((S, H), jnp.float32)
        for hd in range(num_heads):
            sl = slice(hd * dk, (hd + 1) * dk)
            sc = (dot(qr2[:, sl], kr[:, sl].T) + dot(qi2[:, sl], ki[:, sl].T)) / math.sqrt(dk)
            sc = jnp.where(mask > 0, sc, -1e9)
            a = jax.nn.softmax(sc, axis=-1)
            o_r = o_r + dot(dot(a, vr[:, sl]), wo[sl, :])
            o_i = o_i + dot(dot(a, vi[:, sl]), wo[sl, :])
        real1 = real + o_r + p["b_attn"][3:4]
        img1 = img + o_i + p["b_attn"][3:4]

        def ffn(x, idx):
            h = _gelu_tanh(dot(x, p["w1"][idx]) + p["b1"][idx:idx + 1])
            return dot(h, p["w2"][idx]) + p["b2"][idx:idx + 1]

        real2 = real1 + ffn(_layernorm(real1, ln[4:5], ln[5:6]), 0)
        img2 = img1 + ffn(_layernorm(img1, ln[6:7], ln[7:8]), 1)
        return real2, img2

    return jax.vmap(one)(real, img, mask)


if __name__ == "__main__":
    B, S, H, HEADS, DFF = 2, 8, 32, 4, 128
    ROTATE_LR = 0.1

    key = jax.random.PRNGKey(0)
    ks = jax.random.split(key, 12)
    f32 = jnp.float32

    params = {
        "w_attn": (jax.random.normal(ks[0], (4, H, H), f32) / math.sqrt(H)),
        "b_attn": jax.random.normal(ks[1], (4, H), f32) * 0.01,
        "theta":  jax.random.normal(ks[2], (1, H), f32),
        "ln":     jnp.stack([jnp.ones(H, f32), jnp.zeros(H, f32)] * 4, axis=0),
        "w1":     (jax.random.normal(ks[3], (2, H, DFF), f32) / math.sqrt(H)),
        "b1":     jax.random.normal(ks[4], (2, DFF), f32) * 0.01,
        "w2":     (jax.random.normal(ks[5], (2, DFF, H), f32) / math.sqrt(DFF)),
        "b2":     jax.random.normal(ks[6], (2, H), f32) * 0.01,
    }

    real = jax.random.normal(ks[7], (B, S, H), f32)
    img = jax.random.normal(ks[8], (B, S, H), f32)
    lens = jnp.array([S, 5], jnp.int32)
    key_mask = (jnp.arange(S)[None, :] < lens[:, None]).astype(f32)       # (B, S)
    mask = jnp.broadcast_to(key_mask[:, None, :], (B, S, S)).astype(f32)  # (B, S, S)

    out_r, out_i = transformer_polar_block(real, img, mask, params,
                                           num_heads=HEADS, rotate_lr=ROTATE_LR)
    jax.block_until_ready((out_r, out_i))

    ref_r, ref_i = reference(real, img, mask, params,
                             num_heads=HEADS, rotate_lr=ROTATE_LR)
    assert bool(jnp.all(jnp.isfinite(out_r)) & jnp.all(jnp.isfinite(out_i)))
    # Tolerance accounts for deliberate bf16 MXU inputs (f32 accumulation).
    assert bool(jnp.allclose(out_r, ref_r, atol=5e-2, rtol=5e-2)), "real branch mismatch"
    assert bool(jnp.allclose(out_i, ref_i, atol=5e-2, rtol=5e-2)), "img branch mismatch"
    assert float(jnp.mean(jnp.abs(out_r - ref_r))) < 2e-2
    assert float(jnp.mean(jnp.abs(out_i - ref_i))) < 2e-2
    print("KERNEL_OK")
</pallas_src>

<mosaic_0001>
module attributes {stable_mosaic.version = 11 : i64} {
  func.func @_polar_block_kernel(%arg0: i32, %arg1: memref<8x32xf32, #tpu.memory_space<vmem>>, %arg2: memref<8x32xf32, #tpu.memory_space<vmem>>, %arg3: memref<1x8x8xf32, #tpu.memory_space<vmem>>, %arg4: memref<32x96xbf16, #tpu.memory_space<vmem>>, %arg5: memref<32x32xbf16, #tpu.memory_space<vmem>>, %arg6: memref<2x32x128xbf16, #tpu.memory_space<vmem>>, %arg7: memref<2x128x32xbf16, #tpu.memory_space<vmem>>, %arg8: memref<1x96xf32, #tpu.memory_space<vmem>>, %arg9: memref<1x32xf32, #tpu.memory_space<vmem>>, %arg10: memref<2x32xf32, #tpu.memory_space<vmem>>, %arg11: memref<8x32xf32, #tpu.memory_space<vmem>>, %arg12: memref<2x128xf32, #tpu.memory_space<vmem>>, %arg13: memref<2x32xf32, #tpu.memory_space<vmem>>, %arg14: memref<8x32xf32, #tpu.memory_space<vmem>>, %arg15: memref<8x32xf32, #tpu.memory_space<vmem>>) attributes {dimension_semantics = [#tpu.dimension_semantics<parallel>], iteration_bounds = array<i64: 2>, scalar_prefetch = 0 : i64, scratch_operands = 0 : i64, tpu.core_type = #tpu.core_type<tc>, window_params = [{transform_indices = @transform_0, window_bounds = array<i64: 8, 32>}, {transform_indices = @transform_1, window_bounds = array<i64: 8, 32>}, {transform_indices = @transform_2, window_bounds = array<i64: 1, 8, 8>}, {pipeline_mode = #tpu.pipeline_mode<synchronous>, transform_indices = @transform_3, window_bounds = array<i64: 32, 96>}, {pipeline_mode = #tpu.pipeline_mode<synchronous>, transform_indices = @transform_4, window_bounds = array<i64: 32, 32>}, {pipeline_mode = #tpu.pipeline_mode<synchronous>, transform_indices = @transform_5, window_bounds = array<i64: 2, 32, 128>}, {pipeline_mode = #tpu.pipeline_mode<synchronous>, transform_indices = @transform_6, window_bounds = array<i64: 2, 128, 32>}, {pipeline_mode = #tpu.pipeline_mode<synchronous>, transform_indices = @transform_7, window_bounds = array<i64: 1, 96>}, {pipeline_mode = #tpu.pipeline_mode<synchronous>, transform_indices = @transform_8, window_bounds = array<i64: 1, 32>}, {pipeline_mode = #tpu.pipeline_mode<synchronous>, transform_indices = @transform_9, window_bounds = array<i64: 2, 32>}, {pipeline_mode = #tpu.pipeline_mode<synchronous>, transform_indices = @transform_10, window_bounds = array<i64: 8, 32>}, {pipeline_mode = #tpu.pipeline_mode<synchronous>, transform_indices = @transform_11, window_bounds = array<i64: 2, 128>}, {pipeline_mode = #tpu.pipeline_mode<synchronous>, transform_indices = @transform_12, window_bounds = array<i64: 2, 32>}, {transform_indices = @transform_13, window_bounds = array<i64: 8, 32>}, {transform_indices = @transform_14, window_bounds = array<i64: 8, 32>}]} {
    %c0 = arith.constant 0 : index
    %c0_0 = arith.constant 0 : index
    %0 = vector.load %arg1[%c0, %c0_0] : memref<8x32xf32, #tpu.memory_space<vmem>>, vector<8x32xf32>
    %c0_1 = arith.constant 0 : index
    %c0_2 = arith.constant 0 : index
    %1 = vector.load %arg2[%c0_1, %c0_2] : memref<8x32xf32, #tpu.memory_space<vmem>>, vector<8x32xf32>
    %c0_3 = arith.constant 0 : index
    %c0_4 = arith.constant 0 : index
    %2 = vector.load %arg11[%c0_3, %c0_4] : memref<8x32xf32, #tpu.memory_space<vmem>>, vector<8x32xf32>
    %3 = vector.extract_strided_slice %2 {offsets = [0, 0], sizes = [1, 32], strides = [1, 1]} : vector<8x32xf32> to vector<1x32xf32>
    %4 = vector.extract_strided_slice %2 {offsets = [1, 0], sizes = [1, 32], strides = [1, 1]} : vector<8x32xf32> to vector<1x32xf32>
    %cst = arith.constant dense<0.000000e+00> : vector<8xf32>
    %5 = vector.multi_reduction <add>, %0, %cst [1] : vector<8x32xf32> to vector<8xf32>
    %6 = vector.shape_cast %5 : vector<8xf32> to vector<8x1xf32>
    %cst_5 = arith.constant 3.200000e+01 : f32
    %7 = vector.broadcast %cst_5 : f32 to vector<8x1xf32>
    %8 = arith.divf %6, %7 : vector<8x1xf32>
    %9 = vector.broadcast %8 : vector<8x1xf32> to vector<8x32xf32>
    %10 = arith.subf %0, %9 : vector<8x32xf32>
    %11 = arith.mulf %10, %10 : vector<8x32xf32>
    %cst_6 = arith.constant dense<0.000000e+00> : vector<8xf32>
    %12 = vector.multi_reduction <add>, %11, %cst_6 [1] : vector<8x32xf32> to vector<8xf32>
    %13 = vector.shape_cast %12 : vector<8xf32> to vector<8x1xf32>
    %cst_7 = arith.constant 3.200000e+01 : f32
    %14 = vector.broadcast %cst_7 : f32 to vector<8x1xf32>
    %15 = arith.divf %13, %14 : vector<8x1xf32>
    %16 = vector.broadcast %8 : vector<8x1xf32> to vector<8x32xf32>
    %17 = arith.subf %0, %16 : vector<8x32xf32>
    %18 = vector.broadcast %3 : vector<1x32xf32> to vector<8x32xf32>
    %19 = arith.mulf %18, %17 : vector<8x32xf32>
    %cst_8 = arith.constant 9.99999997E-7 : f32
    %20 = vector.broadcast %cst_8 : f32 to vector<8x1xf32>
    %21 = arith.addf %15, %20 : vector<8x1xf32>
    %22 = math.rsqrt %21 : vector<8x1xf32>
    %23 = vector.broadcast %22 : vector<8x1xf32> to vector<8x32xf32>
    %24 = arith.mulf %19, %23 : vector<8x32xf32>
    %25 = vector.broadcast %4 : vector<1x32xf32> to vector<8x32xf32>
    %26 = arith.addf %24, %25 : vector<8x32xf32>
    %27 = vector.extract_strided_slice %2 {offsets = [2, 0], sizes = [1, 32], strides = [1, 1]} : vector<8x32xf32> to vector<1x32xf32>
    %28 = vector.extract_strided_slice %2 {offsets = [3, 0], sizes = [1, 32], strides = [1, 1]} : vector<8x32xf32> to vector<1x32xf32>
    %cst_9 = arith.constant dense<0.000000e+00> : vector<8xf32>
    %29 = vector.multi_reduction <add>, %1, %cst_9 [1] : vector<8x32xf32> to vector<8xf32>
    %30 = vector.shape_cast %29 : vector<8xf32> to vector<8x1xf32>
    %cst_10 = arith.constant 3.200000e+01 : f32
    %31 = vector.broadcast %cst_10 : f32 to vector<8x1xf32>
    %32 = arith.divf %30, %31 : vector<8x1xf32>
    %33 = vector.broadcast %32 : vector<8x1xf32> to vector<8x32xf32>
    %34 = arith.subf %1, %33 : vector<8x32xf32>
    %35 = arith.mulf %34, %34 : vector<8x32xf32>
    %cst_11 = arith.constant dense<0.000000e+00> : vector<8xf32>
    %36 = vector.multi_reduction <add>, %35, %cst_11 [1] : vector<8x32xf32> to vector<8xf32>
    %37 = vector.shape_cast %36 : vector<8xf32> to vector<8x1xf32>
    %cst_12 = arith.constant 3.200000e+01 : f32
    %38 = vector.broadcast %cst_12 : f32 to vector<8x1xf32>
    %39 = arith.divf %37, %38 : vector<8x1xf32>
    %40 = vector.broadcast %32 : vector<8x1xf32> to vector<8x32xf32>
    %41 = arith.subf %1, %40 : vector<8x32xf32>
    %42 = vector.broadcast %27 : vector<1x32xf32> to vector<8x32xf32>
    %43 = arith.mulf %42, %41 : vector<8x32xf32>
    %cst_13 = arith.constant 9.99999997E-7 : f32
    %44 = vector.broadcast %cst_13 : f32 to vector<8x1xf32>
    %45 = arith.addf %39, %44 : vector<8x1xf32>
    %46 = math.rsqrt %45 : vector<8x1xf32>
    %47 = vector.broadcast %46 : vector<8x1xf32> to vector<8x32xf32>
    %48 = arith.mulf %43, %47 : vector<8x32xf32>
    %49 = vector.broadcast %28 : vector<1x32xf32> to vector<8x32xf32>
    %50 = arith.addf %48, %49 : vector<8x32xf32>
    %51 = tpu.concatenate %26, %50 in 0 : vector<8x32xf32>, vector<8x32xf32> -> vector<16x32xf32>
    %52 = arith.truncf %51 : vector<16x32xf32> to vector<16x32xbf16>
    %c0_14 = arith.constant 0 : index
    %c0_15 = arith.constant 0 : index
    %53 = vector.load %arg4[%c0_14, %c0_15] : memref<32x96xbf16, #tpu.memory_space<vmem>>, vector<32x96xbf16>
    %cst_16 = arith.constant dense<0.000000e+00> : vector<16x96xf32>
    %54 = tpu.matmul %52, %53, %cst_16 {dimension_numbers = #tpu.dot_dimension_numbers<[1], [0], [0], [1], [0, 0, 1, 1], [], []>} : vector<16x32xbf16>, vector<32x96xbf16>, vector<16x96xf32> -> vector<16x96xf32>
    %c0_17 = arith.constant 0 : index
    %c0_18 = arith.constant 0 : index
    %55 = vector.load %arg8[%c0_17, %c0_18] : memref<1x96xf32, #tpu.memory_space<vmem>>, vector<1x96xf32>
    %56 = vector.broadcast %55 : vector<1x96xf32> to vector<16x96xf32>
    %57 = arith.addf %54, %56 : vector<16x96xf32>
    %58 = vector.extract_strided_slice %57 {offsets = [0, 0], sizes = [8, 32], strides = [1, 1]} : vector<16x96xf32> to vector<8x32xf32>
    %59 = vector.extract_strided_slice %57 {offsets = [0, 32], sizes = [8, 32], strides = [1, 1]} : vector<16x96xf32> to vector<8x32xf32>
    %60 = vector.extract_strided_slice %57 {offsets = [0, 64], sizes = [8, 32], strides = [1, 1]} : vector<16x96xf32> to vector<8x32xf32>
    %61 = vector.extract_strided_slice %57 {offsets = [8, 0], sizes = [8, 32], strides = [1, 1]} : vector<16x96xf32> to vector<8x32xf32>
    %62 = vector.extract_strided_slice %57 {offsets = [8, 32], sizes = [8, 32], strides = [1, 1]} : vector<16x96xf32> to vector<8x32xf32>
    %63 = vector.extract_strided_slice %57 {offsets = [8, 64], sizes = [8, 32], strides = [1, 1]} : vector<16x96xf32> to vector<8x32xf32>
    %c0_19 = arith.constant 0 : index
    %c0_20 = arith.constant 0 : index
    %64 = vector.load %arg10[%c0_19, %c0_20] : memref<2x32xf32, #tpu.memory_space<vmem>>, vector<1x32xf32>
    %c1 = arith.constant 1 : index
    %c0_21 = arith.constant 0 : index
    %65 = vector.load %arg10[%c1, %c0_21] : memref<2x32xf32, #tpu.memory_space<vmem>>, vector<1x32xf32>
    %66 = vector.broadcast %64 : vector<1x32xf32> to vector<8x32xf32>
    %67 = arith.mulf %58, %66 : vector<8x32xf32>
    %68 = vector.broadcast %65 : vector<1x32xf32> to vector<8x32xf32>
    %69 = arith.mulf %61, %68 : vector<8x32xf32>
    %70 = arith.subf %67, %69 : vector<8x32xf32>
    %71 = vector.broadcast %65 : vector<1x32xf32> to vector<8x32xf32>
    %72 = arith.mulf %58, %71 : vector<8x32xf32>
    %73 = vector.broadcast %64 : vector<1x32xf32> to vector<8x32xf32>
    %74 = arith.mulf %61, %73 : vector<8x32xf32>
    %75 = arith.addf %72, %74 : vector<8x32xf32>
    %c0_22 = arith.constant 0 : index
    %c0_23 = arith.constant 0 : index
    %c0_24 = arith.constant 0 : index
    %76 = vector.load %arg3[%c0_22, %c0_23, %c0_24] : memref<1x8x8xf32, #tpu.memory_space<vmem>>, vector<1x8x8xf32>
    %cst_25 = arith.constant 0.000000e+00 : f32
    %77 = vector.broadcast %cst_25 : f32 to vector<1x8x8xf32>
    %78 = arith.cmpf ogt, %76, %77 : vector<1x8x8xf32>
    %cst_26 = arith.constant 0.000000e+00 : f32
    %cst_27 = arith.constant -1.000000e+09 : f32
    %79 = vector.broadcast %cst_26 : f32 to vector<1x8x8xf32>
    %80 = vector.broadcast %cst_27 : f32 to vector<1x8x8xf32>
    %81 = arith.select %78, %79, %80 : vector<1x8x8xi1>, vector<1x8x8xf32>
    %82 = vector.extract_strided_slice %70 {offsets = [0, 0], sizes = [8, 8], strides = [1, 1]} : vector<8x32xf32> to vector<8x8xf32>
    %83 = vector.extract_strided_slice %75 {offsets = [0, 0], sizes = [8, 8], strides = [1, 1]} : vector<8x32xf32> to vector<8x8xf32>
    %84 = tpu.concatenate %82, %83 in 1 : vector<8x8xf32>, vector<8x8xf32> -> vector<8x16xf32>
    %85 = arith.truncf %84 : vector<8x16xf32> to vector<8x16xbf16>
    %86 = vector.shape_cast %85 : vector<8x16xbf16> to vector<1x8x16xbf16>
    %87 = vector.extract_strided_slice %59 {offsets = [0, 0], sizes = [8, 8], strides = [1, 1]} : vector<8x32xf32> to vector<8x8xf32>
    %88 = vector.extract_strided_slice %62 {offsets = [0, 0], sizes = [8, 8], strides = [1, 1]} : vector<8x32xf32> to vector<8x8xf32>
    %89 = tpu.concatenate %87, %88 in 1 : vector<8x8xf32>, vector<8x8xf32> -> vector<8x16xf32>
    %90 = arith.truncf %89 : vector<8x16xf32> to vector<8x16xbf16>
    %91 = vector.shape_cast %90 : vector<8x16xbf16> to vector<1x8x16xbf16>
    %92 = vector.extract_strided_slice %60 {offsets = [0, 0], sizes = [8, 8], strides = [1, 1]} : vector<8x32xf32> to vector<8x8xf32>
    %93 = vector.extract_strided_slice %63 {offsets = [0, 0], sizes = [8, 8], strides = [1, 1]} : vector<8x32xf32> to vector<8x8xf32>
    %94 = tpu.concatenate %92, %93 in 1 : vector<8x8xf32>, vector<8x8xf32> -> vector<8x16xf32>
    %95 = arith.truncf %94 : vector<8x16xf32> to vector<8x16xbf16>
    %96 = vector.shape_cast %95 : vector<8x16xbf16> to vector<1x8x16xbf16>
    "tpu.trace_start"() <{level = 10 : i32, message = "bqd,bkd->bqk"}> : () -> ()
    %cst_28 = arith.constant dense<0.000000e+00> : vector<1x8x8xf32>
    %97 = tpu.matmul %86, %91, %cst_28 {dimension_numbers = #tpu.dot_dimension_numbers<[2], [2], [1], [1], [0, 0, 0, 1, 1, 1], [0], [0]>} : vector<1x8x16xbf16>, vector<1x8x16xbf16>, vector<1x8x8xf32> -> vector<1x8x8xf32>
    "tpu.trace_stop"() : () -> ()
    %cst_29 = arith.constant 0.353553385 : f32
    %98 = vector.broadcast %cst_29 : f32 to vector<1x8x8xf32>
    %99 = arith.mulf %97, %98 : vector<1x8x8xf32>
    %100 = arith.addf %99, %81 : vector<1x8x8xf32>
    %cst_30 = arith.constant dense<0xFF800000> : vector<1x8xf32>
    %101 = vector.multi_reduction <maximumf>, %100, %cst_30 [2] : vector<1x8x8xf32> to vector<1x8xf32>
    %102 = vector.shape_cast %101 : vector<1x8xf32> to vector<1x8x1xf32>
    %103 = vector.broadcast %102 : vector<1x8x1xf32> to vector<1x8x8xf32>
    %104 = arith.subf %100, %103 : vector<1x8x8xf32>
    %105 = math.exp %104 : vector<1x8x8xf32>
    %cst_31 = arith.constant dense<0.000000e+00> : vector<1x8xf32>
    %106 = vector.multi_reduction <add>, %105, %cst_31 [2] : vector<1x8x8xf32> to vector<1x8xf32>
    %107 = vector.shape_cast %106 : vector<1x8xf32> to vector<1x8x1xf32>
    %108 = tpu.reciprocal %107 {approx = true} : vector<1x8x1xf32> -> vector<1x8x1xf32>
    %109 = vector.broadcast %108 : vector<1x8x1xf32> to vector<1x8x8xf32>
    %110 = arith.mulf %105, %109 : vector<1x8x8xf32>
    %111 = arith.truncf %110 : vector<1x8x8xf32> to vector<1x8x8xbf16>
    "tpu.trace_start"() <{level = 10 : i32, message = "bqk,bkd->bqd"}> : () -> ()
    %cst_32 = arith.constant dense<0.000000e+00> : vector<1x8x16xf32>
    %112 = tpu.matmul %111, %96, %cst_32 {dimension_numbers = #tpu.dot_dimension_numbers<[2], [1], [1], [2], [0, 0, 0, 1, 1, 2], [0], [0]>} : vector<1x8x8xbf16>, vector<1x8x16xbf16>, vector<1x8x16xf32> -> vector<1x8x16xf32>
    "tpu.trace_stop"() : () -> ()
    %113 = vector.shape_cast %112 : vector<1x8x16xf32> to vector<8x16xf32>
    %114 = vector.extract_strided_slice %113 {offsets = [0, 0], sizes = [8, 8], strides = [1, 1]} : vector<8x16xf32> to vector<8x8xf32>
    %115 = vector.extract_strided_slice %113 {offsets = [0, 8], sizes = [8, 8], strides = [1, 1]} : vector<8x16xf32> to vector<8x8xf32>
    %116 = vector.extract_strided_slice %70 {offsets = [0, 8], sizes = [8, 8], strides = [1, 1]} : vector<8x32xf32> to vector<8x8xf32>
    %117 = vector.extract_strided_slice %75 {offsets = [0, 8], sizes = [8, 8], strides = [1, 1]} : vector<8x32xf32> to vector<8x8xf32>
    %118 = tpu.concatenate %116, %117 in 1 : vector<8x8xf32>, vector<8x8xf32> -> vector<8x16xf32>
    %119 = arith.truncf %118 : vector<8x16xf32> to vector<8x16xbf16>
    %120 = vector.shape_cast %119 : vector<8x16xbf16> to vector<1x8x16xbf16>
    %121 = vector.extract_strided_slice %59 {offsets = [0, 8], sizes = [8, 8], strides = [1, 1]} : vector<8x32xf32> to vector<8x8xf32>
    %122 = vector.extract_strided_slice %62 {offsets = [0, 8], sizes = [8, 8], strides = [1, 1]} : vector<8x32xf32> to vector<8x8xf32>
    %123 = tpu.concatenate %121, %122 in 1 : vector<8x8xf32>, vector<8x8xf32> -> vector<8x16xf32>
    %124 = arith.truncf %123 : vector<8x16xf32> to vector<8x16xbf16>
    %125 = vector.shape_cast %124 : vector<8x16xbf16> to vector<1x8x16xbf16>
    %126 = vector.extract_strided_slice %60 {offsets = [0, 8], sizes = [8, 8], strides = [1, 1]} : vector<8x32xf32> to vector<8x8xf32>
    %127 = vector.extract_strided_slice %63 {offsets = [0, 8], sizes = [8, 8], strides = [1, 1]} : vector<8x32xf32> to vector<8x8xf32>
    %128 = tpu.concatenate %126, %127 in 1 : vector<8x8xf32>, vector<8x8xf32> -> vector<8x16xf32>
    %129 = arith.truncf %128 : vector<8x16xf32> to vector<8x16xbf16>
    %130 = vector.shape_cast %129 : vector<8x16xbf16> to vector<1x8x16xbf16>
    "tpu.trace_start"() <{level = 10 : i32, message = "bqd,bkd->bqk"}> : () -> ()
    %cst_33 = arith.constant dense<0.000000e+00> : vector<1x8x8xf32>
    %131 = tpu.matmul %120, %125, %cst_33 {dimension_numbers = #tpu.dot_dimension_numbers<[2], [2], [1], [1], [0, 0, 0, 1, 1, 1], [0], [0]>} : vector<1x8x16xbf16>, vector<1x8x16xbf16>, vector<1x8x8xf32> -> vector<1x8x8xf32>
    "tpu.trace_stop"() : () -> ()
    %cst_34 = arith.constant 0.353553385 : f32
    %132 = vector.broadcast %cst_34 : f32 to vector<1x8x8xf32>
    %133 = arith.mulf %131, %132 : vector<1x8x8xf32>
    %134 = arith.addf %133, %81 : vector<1x8x8xf32>
    %cst_35 = arith.constant dense<0xFF800000> : vector<1x8xf32>
    %135 = vector.multi_reduction <maximumf>, %134, %cst_35 [2] : vector<1x8x8xf32> to vector<1x8xf32>
    %136 = vector.shape_cast %135 : vector<1x8xf32> to vector<1x8x1xf32>
    %137 = vector.broadcast %136 : vector<1x8x1xf32> to vector<1x8x8xf32>
    %138 = arith.subf %134, %137 : vector<1x8x8xf32>
    %139 = math.exp %138 : vector<1x8x8xf32>
    %cst_36 = arith.constant dense<0.000000e+00> : vector<1x8xf32>
    %140 = vector.multi_reduction <add>, %139, %cst_36 [2] : vector<1x8x8xf32> to vector<1x8xf32>
    %141 = vector.shape_cast %140 : vector<1x8xf32> to vector<1x8x1xf32>
    %142 = tpu.reciprocal %141 {approx = true} : vector<1x8x1xf32> -> vector<1x8x1xf32>
    %143 = vector.broadcast %142 : vector<1x8x1xf32> to vector<1x8x8xf32>
    %144 = arith.mulf %139, %143 : vector<1x8x8xf32>
    %145 = arith.truncf %144 : vector<1x8x8xf32> to vector<1x8x8xbf16>
    "tpu.trace_start"() <{level = 10 : i32, message = "bqk,bkd->bqd"}> : () -> ()
    %cst_37 = arith.constant dense<0.000000e+00> : vector<1x8x16xf32>
    %146 = tpu.matmul %145, %130, %cst_37 {dimension_numbers = #tpu.dot_dimension_numbers<[2], [1], [1], [2], [0, 0, 0, 1, 1, 2], [0], [0]>} : vector<1x8x8xbf16>, vector<1x8x16xbf16>, vector<1x8x16xf32> -> vector<1x8x16xf32>
    "tpu.trace_stop"() : () -> ()
    %147 = vector.shape_cast %146 : vector<1x8x16xf32> to vector<8x16xf32>
    %148 = vector.extract_strided_slice %147 {offsets = [0, 0], sizes = [8, 8], strides = [1, 1]} : vector<8x16xf32> to vector<8x8xf32>
    %149 = vector.extract_strided_slice %147 {offsets = [0, 8], sizes = [8, 8], strides = [1, 1]} : vector<8x16xf32> to vector<8x8xf32>
    %150 = vector.extract_strided_slice %70 {offsets = [0, 16], sizes = [8, 8], strides = [1, 1]} : vector<8x32xf32> to vector<8x8xf32>
    %151 = vector.extract_strided_slice %75 {offsets = [0, 16], sizes = [8, 8], strides = [1, 1]} : vector<8x32xf32> to vector<8x8xf32>
    %152 = tpu.concatenate %150, %151 in 1 : vector<8x8xf32>, vector<8x8xf32> -> vector<8x16xf32>
    %153 = arith.truncf %152 : vector<8x16xf32> to vector<8x16xbf16>
    %154 = vector.shape_cast %153 : vector<8x16xbf16> to vector<1x8x16xbf16>
    %155 = vector.extract_strided_slice %59 {offsets = [0, 16], sizes = [8, 8], strides = [1, 1]} : vector<8x32xf32> to vector<8x8xf32>
    %156 = vector.extract_strided_slice %62 {offsets = [0, 16], sizes = [8, 8], strides = [1, 1]} : vector<8x32xf32> to vector<8x8xf32>
    %157 = tpu.concatenate %155, %156 in 1 : vector<8x8xf32>, vector<8x8xf32> -> vector<8x16xf32>
    %158 = arith.truncf %157 : vector<8x16xf32> to vector<8x16xbf16>
    %159 = vector.shape_cast %158 : vector<8x16xbf16> to vector<1x8x16xbf16>
    %160 = vector.extract_strided_slice %60 {offsets = [0, 16], sizes = [8, 8], strides = [1, 1]} : vector<8x32xf32> to vector<8x8xf32>
    %161 = vector.extract_strided_slice %63 {offsets = [0, 16], sizes = [8, 8], strides = [1, 1]} : vector<8x32xf32> to vector<8x8xf32>
    %162 = tpu.concatenate %160, %161 in 1 : vector<8x8xf32>, vector<8x8xf32> -> vector<8x16xf32>
    %163 = arith.truncf %162 : vector<8x16xf32> to vector<8x16xbf16>
    %164 = vector.shape_cast %163 : vector<8x16xbf16> to vector<1x8x16xbf16>
    "tpu.trace_start"() <{level = 10 : i32, message = "bqd,bkd->bqk"}> : () -> ()
    %cst_38 = arith.constant dense<0.000000e+00> : vector<1x8x8xf32>
    %165 = tpu.matmul %154, %159, %cst_38 {dimension_numbers = #tpu.dot_dimension_numbers<[2], [2], [1], [1], [0, 0, 0, 1, 1, 1], [0], [0]>} : vector<1x8x16xbf16>, vector<1x8x16xbf16>, vector<1x8x8xf32> -> vector<1x8x8xf32>
    "tpu.trace_stop"() : () -> ()
    %cst_39 = arith.constant 0.353553385 : f32
    %166 = vector.broadcast %cst_39 : f32 to vector<1x8x8xf32>
    %167 = arith.mulf %165, %166 : vector<1x8x8xf32>
    %168 = arith.addf %167, %81 : vector<1x8x8xf32>
    %cst_40 = arith.constant dense<0xFF800000> : vector<1x8xf32>
    %169 = vector.multi_reduction <maximumf>, %168, %cst_40 [2] : vector<1x8x8xf32> to vector<1x8xf32>
    %170 = vector.shape_cast %169 : vector<1x8xf32> to vector<1x8x1xf32>
    %171 = vector.broadcast %170 : vector<1x8x1xf32> to vector<1x8x8xf32>
    %172 = arith.subf %168, %171 : vector<1x8x8xf32>
    %173 = math.exp %172 : vector<1x8x8xf32>
    %cst_41 = arith.constant dense<0.000000e+00> : vector<1x8xf32>
    %174 = vector.multi_reduction <add>, %173, %cst_41 [2] : vector<1x8x8xf32> to vector<1x8xf32>
    %175 = vector.shape_cast %174 : vector<1x8xf32> to vector<1x8x1xf32>
    %176 = tpu.reciprocal %175 {approx = true} : vector<1x8x1xf32> -> vector<1x8x1xf32>
    %177 = vector.broadcast %176 : vector<1x8x1xf32> to vector<1x8x8xf32>
    %178 = arith.mulf %173, %177 : vector<1x8x8xf32>
    %179 = arith.truncf %178 : vector<1x8x8xf32> to vector<1x8x8xbf16>
    "tpu.trace_start"() <{level = 10 : i32, message = "bqk,bkd->bqd"}> : () -> ()
    %cst_42 = arith.constant dense<0.000000e+00> : vector<1x8x16xf32>
    %180 = tpu.matmul %179, %164, %cst_42 {dimension_numbers = #tpu.dot_dimension_numbers<[2], [1], [1], [2], [0, 0, 0, 1, 1, 2], [0], [0]>} : vector<1x8x8xbf16>, vector<1x8x16xbf16>, vector<1x8x16xf32> -> vector<1x8x16xf32>
    "tpu.trace_stop"() : () -> ()
    %181 = vector.shape_cast %180 : vector<1x8x16xf32> to vector<8x16xf32>
    %182 = vector.extract_strided_slice %181 {offsets = [0, 0], sizes = [8, 8], strides = [1, 1]} : vector<8x16xf32> to vector<8x8xf32>
    %183 = vector.extract_strided_slice %181 {offsets = [0, 8], sizes = [8, 8], strides = [1, 1]} : vector<8x16xf32> to vector<8x8xf32>
    %184 = vector.extract_strided_slice %70 {offsets = [0, 24], sizes = [8, 8], strides = [1, 1]} : vector<8x32xf32> to vector<8x8xf32>
    %185 = vector.extract_strided_slice %75 {offsets = [0, 24], sizes = [8, 8], strides = [1, 1]} : vector<8x32xf32> to vector<8x8xf32>
    %186 = tpu.concatenate %184, %185 in 1 : vector<8x8xf32>, vector<8x8xf32> -> vector<8x16xf32>
    %187 = arith.truncf %186 : vector<8x16xf32> to vector<8x16xbf16>
    %188 = vector.shape_cast %187 : vector<8x16xbf16> to vector<1x8x16xbf16>
    %189 = vector.extract_strided_slice %59 {offsets = [0, 24], sizes = [8, 8], strides = [1, 1]} : vector<8x32xf32> to vector<8x8xf32>
    %190 = vector.extract_strided_slice %62 {offsets = [0, 24], sizes = [8, 8], strides = [1, 1]} : vector<8x32xf32> to vector<8x8xf32>
    %191 = tpu.concatenate %189, %190 in 1 : vector<8x8xf32>, vector<8x8xf32> -> vector<8x16xf32>
    %192 = arith.truncf %191 : vector<8x16xf32> to vector<8x16xbf16>
    %193 = vector.shape_cast %192 : vector<8x16xbf16> to vector<1x8x16xbf16>
    %194 = vector.extract_strided_slice %60 {offsets = [0, 24], sizes = [8, 8], strides = [1, 1]} : vector<8x32xf32> to vector<8x8xf32>
    %195 = vector.extract_strided_slice %63 {offsets = [0, 24], sizes = [8, 8], strides = [1, 1]} : vector<8x32xf32> to vector<8x8xf32>
    %196 = tpu.concatenate %194, %195 in 1 : vector<8x8xf32>, vector<8x8xf32> -> vector<8x16xf32>
    %197 = arith.truncf %196 : vector<8x16xf32> to vector<8x16xbf16>
    %198 = vector.shape_cast %197 : vector<8x16xbf16> to vector<1x8x16xbf16>
    "tpu.trace_start"() <{level = 10 : i32, message = "bqd,bkd->bqk"}> : () -> ()
    %cst_43 = arith.constant dense<0.000000e+00> : vector<1x8x8xf32>
    %199 = tpu.matmul %188, %193, %cst_43 {dimension_numbers = #tpu.dot_dimension_numbers<[2], [2], [1], [1], [0, 0, 0, 1, 1, 1], [0], [0]>} : vector<1x8x16xbf16>, vector<1x8x16xbf16>, vector<1x8x8xf32> -> vector<1x8x8xf32>
    "tpu.trace_stop"() : () -> ()
    %cst_44 = arith.constant 0.353553385 : f32
    %200 = vector.broadcast %cst_44 : f32 to vector<1x8x8xf32>
    %201 = arith.mulf %199, %200 : vector<1x8x8xf32>
    %202 = arith.addf %201, %81 : vector<1x8x8xf32>
    %cst_45 = arith.constant dense<0xFF800000> : vector<1x8xf32>
    %203 = vector.multi_reduction <maximumf>, %202, %cst_45 [2] : vector<1x8x8xf32> to vector<1x8xf32>
    %204 = vector.shape_cast %203 : vector<1x8xf32> to vector<1x8x1xf32>
    %205 = vector.broadcast %204 : vector<1x8x1xf32> to vector<1x8x8xf32>
    %206 = arith.subf %202, %205 : vector<1x8x8xf32>
    %207 = math.exp %206 : vector<1x8x8xf32>
    %cst_46 = arith.constant dense<0.000000e+00> : vector<1x8xf32>
    %208 = vector.multi_reduction <add>, %207, %cst_46 [2] : vector<1x8x8xf32> to vector<1x8xf32>
    %209 = vector.shape_cast %208 : vector<1x8xf32> to vector<1x8x1xf32>
    %210 = tpu.reciprocal %209 {approx = true} : vector<1x8x1xf32> -> vector<1x8x1xf32>
    %211 = vector.broadcast %210 : vector<1x8x1xf32> to vector<1x8x8xf32>
    %212 = arith.mulf %207, %211 : vector<1x8x8xf32>
    %213 = arith.truncf %212 : vector<1x8x8xf32> to vector<1x8x8xbf16>
    "tpu.trace_start"() <{level = 10 : i32, message = "bqk,bkd->bqd"}> : () -> ()
    %cst_47 = arith.constant dense<0.000000e+00> : vector<1x8x16xf32>
    %214 = tpu.matmul %213, %198, %cst_47 {dimension_numbers = #tpu.dot_dimension_numbers<[2], [1], [1], [2], [0, 0, 0, 1, 1, 2], [0], [0]>} : vector<1x8x8xbf16>, vector<1x8x16xbf16>, vector<1x8x16xf32> -> vector<1x8x16xf32>
    "tpu.trace_stop"() : () -> ()
    %215 = vector.shape_cast %214 : vector<1x8x16xf32> to vector<8x16xf32>
    %216 = vector.extract_strided_slice %215 {offsets = [0, 0], sizes = [8, 8], strides = [1, 1]} : vector<8x16xf32> to vector<8x8xf32>
    %217 = vector.extract_strided_slice %215 {offsets = [0, 8], sizes = [8, 8], strides = [1, 1]} : vector<8x16xf32> to vector<8x8xf32>
    %218 = tpu.concatenate %114, %148, %182, %216 in 1 : vector<8x8xf32>, vector<8x8xf32>, vector<8x8xf32>, vector<8x8xf32> -> vector<8x32xf32>
    %219 = tpu.concatenate %115, %149, %183, %217 in 1 : vector<8x8xf32>, vector<8x8xf32>, vector<8x8xf32>, vector<8x8xf32> -> vector<8x32xf32>
    %220 = tpu.concatenate %218, %219 in 0 : vector<8x32xf32>, vector<8x32xf32> -> vector<16x32xf32>
    %221 = arith.truncf %220 : vector<16x32xf32> to vector<16x32xbf16>
    %c0_48 = arith.constant 0 : index
    %c0_49 = arith.constant 0 : index
    %222 = vector.load %arg5[%c0_48, %c0_49] : memref<32x32xbf16, #tpu.memory_space<vmem>>, vector<32x32xbf16>
    %cst_50 = arith.constant dense<0.000000e+00> : vector<16x32xf32>
    %223 = tpu.matmul %221, %222, %cst_50 {dimension_numbers = #tpu.dot_dimension_numbers<[1], [0], [0], [1], [0, 0, 1, 1], [], []>} : vector<16x32xbf16>, vector<32x32xbf16>, vector<16x32xf32> -> vector<16x32xf32>
    %c0_51 = arith.constant 0 : index
    %c0_52 = arith.constant 0 : index
    %224 = vector.load %arg9[%c0_51, %c0_52] : memref<1x32xf32, #tpu.memory_space<vmem>>, vector<1x32xf32>
    %225 = vector.broadcast %224 : vector<1x32xf32> to vector<16x32xf32>
    %226 = arith.addf %223, %225 : vector<16x32xf32>
    %227 = vector.extract_strided_slice %226 {offsets = [0, 0], sizes = [8, 32], strides = [1, 1]} : vector<16x32xf32> to vector<8x32xf32>
    %228 = arith.addf %0, %227 : vector<8x32xf32>
    %229 = vector.extract_strided_slice %226 {offsets = [8, 0], sizes = [8, 32], strides = [1, 1]} : vector<16x32xf32> to vector<8x32xf32>
    %230 = arith.addf %1, %229 : vector<8x32xf32>
    %231 = vector.extract_strided_slice %2 {offsets = [4, 0], sizes = [1, 32], strides = [1, 1]} : vector<8x32xf32> to vector<1x32xf32>
    %232 = vector.extract_strided_slice %2 {offsets = [5, 0], sizes = [1, 32], strides = [1, 1]} : vector<8x32xf32> to vector<1x32xf32>
    %cst_53 = arith.constant dense<0.000000e+00> : vector<8xf32>
    %233 = vector.multi_reduction <add>, %228, %cst_53 [1] : vector<8x32xf32> to vector<8xf32>
    %234 = vector.shape_cast %233 : vector<8xf32> to vector<8x1xf32>
    %cst_54 = arith.constant 3.200000e+01 : f32
    %235 = vector.broadcast %cst_54 : f32 to vector<8x1xf32>
    %236 = arith.divf %234, %235 : vector<8x1xf32>
    %237 = vector.broadcast %236 : vector<8x1xf32> to vector<8x32xf32>
    %238 = arith.subf %228, %237 : vector<8x32xf32>
    %239 = arith.mulf %238, %238 : vector<8x32xf32>
    %cst_55 = arith.constant dense<0.000000e+00> : vector<8xf32>
    %240 = vector.multi_reduction <add>, %239, %cst_55 [1] : vector<8x32xf32> to vector<8xf32>
    %241 = vector.shape_cast %240 : vector<8xf32> to vector<8x1xf32>
    %cst_56 = arith.constant 3.200000e+01 : f32
    %242 = vector.broadcast %cst_56 : f32 to vector<8x1xf32>
    %243 = arith.divf %241, %242 : vector<8x1xf32>
    %244 = vector.broadcast %236 : vector<8x1xf32> to vector<8x32xf32>
    %245 = arith.subf %228, %244 : vector<8x32xf32>
    %246 = vector.broadcast %231 : vector<1x32xf32> to vector<8x32xf32>
    %247 = arith.mulf %246, %245 : vector<8x32xf32>
    %cst_57 = arith.constant 9.99999997E-7 : f32
    %248 = vector.broadcast %cst_57 : f32 to vector<8x1xf32>
    %249 = arith.addf %243, %248 : vector<8x1xf32>
    %250 = math.rsqrt %249 : vector<8x1xf32>
    %251 = vector.broadcast %250 : vector<8x1xf32> to vector<8x32xf32>
    %252 = arith.mulf %247, %251 : vector<8x32xf32>
    %253 = vector.broadcast %232 : vector<1x32xf32> to vector<8x32xf32>
    %254 = arith.addf %252, %253 : vector<8x32xf32>
    %255 = vector.extract_strided_slice %2 {offsets = [6, 0], sizes = [1, 32], strides = [1, 1]} : vector<8x32xf32> to vector<1x32xf32>
    %256 = vector.extract_strided_slice %2 {offsets = [7, 0], sizes = [1, 32], strides = [1, 1]} : vector<8x32xf32> to vector<1x32xf32>
    %cst_58 = arith.constant dense<0.000000e+00> : vector<8xf32>
    %257 = vector.multi_reduction <add>, %230, %cst_58 [1] : vector<8x32xf32> to vector<8xf32>
    %258 = vector.shape_cast %257 : vector<8xf32> to vector<8x1xf32>
    %cst_59 = arith.constant 3.200000e+01 : f32
    %259 = vector.broadcast %cst_59 : f32 to vector<8x1xf32>
    %260 = arith.divf %258, %259 : vector<8x1xf32>
    %261 = vector.broadcast %260 : vector<8x1xf32> to vector<8x32xf32>
    %262 = arith.subf %230, %261 : vector<8x32xf32>
    %263 = arith.mulf %262, %262 : vector<8x32xf32>
    %cst_60 = arith.constant dense<0.000000e+00> : vector<8xf32>
    %264 = vector.multi_reduction <add>, %263, %cst_60 [1] : vector<8x32xf32> to vector<8xf32>
    %265 = vector.shape_cast %264 : vector<8xf32> to vector<8x1xf32>
    %cst_61 = arith.constant 3.200000e+01 : f32
    %266 = vector.broadcast %cst_61 : f32 to vector<8x1xf32>
    %267 = arith.divf %265, %266 : vector<8x1xf32>
    %268 = vector.broadcast %260 : vector<8x1xf32> to vector<8x32xf32>
    %269 = arith.subf %230, %268 : vector<8x32xf32>
    %270 = vector.broadcast %255 : vector<1x32xf32> to vector<8x32xf32>
    %271 = arith.mulf %270, %269 : vector<8x32xf32>
    %cst_62 = arith.constant 9.99999997E-7 : f32
    %272 = vector.broadcast %cst_62 : f32 to vector<8x1xf32>
    %273 = arith.addf %267, %272 : vector<8x1xf32>
    %274 = math.rsqrt %273 : vector<8x1xf32>
    %275 = vector.broadcast %274 : vector<8x1xf32> to vector<8x32xf32>
    %276 = arith.mulf %271, %275 : vector<8x32xf32>
    %277 = vector.broadcast %256 : vector<1x32xf32> to vector<8x32xf32>
    %278 = arith.addf %276, %277 : vector<8x32xf32>
    %279 = vector.shape_cast %254 : vector<8x32xf32> to vector<1x8x32xf32>
    %280 = vector.shape_cast %278 : vector<8x32xf32> to vector<1x8x32xf32>
    %281 = tpu.concatenate %279, %280 in 0 : vector<1x8x32xf32>, vector<1x8x32xf32> -> vector<2x8x32xf32>
    %282 = arith.truncf %281 : vector<2x8x32xf32> to vector<2x8x32xbf16>
    %c0_63 = arith.constant 0 : index
    %c0_64 = arith.constant 0 : index
    %c0_65 = arith.constant 0 : index
    %283 = vector.load %arg6[%c0_63, %c0_64, %c0_65] : memref<2x32x128xbf16, #tpu.memory_space<vmem>>, vector<2x32x128xbf16>
    "tpu.trace_start"() <{level = 10 : i32, message = "brh,bhf->brf"}> : () -> ()
    %cst_66 = arith.constant dense<0.000000e+00> : vector<2x8x128xf32>
    %284 = tpu.matmul %282, %283, %cst_66 {dimension_numbers = #tpu.dot_dimension_numbers<[2], [1], [1], [2], [0, 0, 0, 1, 1, 2], [0], [0]>} : vector<2x8x32xbf16>, vector<2x32x128xbf16>, vector<2x8x128xf32> -> vector<2x8x128xf32>
    "tpu.trace_stop"() : () -> ()
    %c0_67 = arith.constant 0 : index
    %c0_68 = arith.constant 0 : index
    %285 = vector.load %arg12[%c0_67, %c0_68] : memref<2x128xf32, #tpu.memory_space<vmem>>, vector<2x128xf32>
    %286 = vector.shape_cast %285 : vector<2x128xf32> to vector<2x1x128xf32>
    %287 = vector.broadcast %286 : vector<2x1x128xf32> to vector<2x8x128xf32>
    %288 = arith.addf %284, %287 : vector<2x8x128xf32>
    %cst_69 = arith.constant 5.000000e-01 : f32
    %289 = vector.broadcast %cst_69 : f32 to vector<2x8x128xf32>
    %290 = arith.mulf %289, %288 : vector<2x8x128xf32>
    %291 = arith.mulf %288, %288 : vector<2x8x128xf32>
    %292 = arith.mulf %288, %291 : vector<2x8x128xf32>
    %cst_70 = arith.constant 4.471500e-02 : f32
    %293 = vector.broadcast %cst_70 : f32 to vector<2x8x128xf32>
    %294 = arith.mulf %293, %292 : vector<2x8x128xf32>
    %295 = arith.addf %288, %294 : vector<2x8x128xf32>
    %cst_71 = arith.constant 0.797884583 : f32
    %296 = vector.broadcast %cst_71 : f32 to vector<2x8x128xf32>
    %297 = arith.mulf %296, %295 : vector<2x8x128xf32>
    %298 = math.tanh %297 : vector<2x8x128xf32>
    %cst_72 = arith.constant 1.000000e+00 : f32
    %299 = vector.broadcast %cst_72 : f32 to vector<2x8x128xf32>
    %300 = arith.addf %299, %298 : vector<2x8x128xf32>
    %301 = arith.mulf %290, %300 : vector<2x8x128xf32>
    %302 = arith.truncf %301 : vector<2x8x128xf32> to vector<2x8x128xbf16>
    %c0_73 = arith.constant 0 : index
    %c0_74 = arith.constant 0 : index
    %c0_75 = arith.constant 0 : index
    %303 = vector.load %arg7[%c0_73, %c0_74, %c0_75] : memref<2x128x32xbf16, #tpu.memory_space<vmem>>, vector<2x128x32xbf16>
    "tpu.trace_start"() <{level = 10 : i32, message = "brf,bfh->brh"}> : () -> ()
    %cst_76 = arith.constant dense<0.000000e+00> : vector<2x8x32xf32>
    %304 = tpu.matmul %302, %303, %cst_76 {dimension_numbers = #tpu.dot_dimension_numbers<[2], [1], [1], [2], [0, 0, 0, 1, 1, 2], [0], [0]>} : vector<2x8x128xbf16>, vector<2x128x32xbf16>, vector<2x8x32xf32> -> vector<2x8x32xf32>
    "tpu.trace_stop"() : () -> ()
    %c0_77 = arith.constant 0 : index
    %c0_78 = arith.constant 0 : index
    %305 = vector.load %arg13[%c0_77, %c0_78] : memref<2x32xf32, #tpu.memory_space<vmem>>, vector<2x32xf32>
    %306 = vector.shape_cast %305 : vector<2x32xf32> to vector<2x1x32xf32>
    %307 = vector.broadcast %306 : vector<2x1x32xf32> to vector<2x8x32xf32>
    %308 = arith.addf %304, %307 : vector<2x8x32xf32>
    %309 = vector.extract_strided_slice %308 {offsets = [0, 0, 0], sizes = [1, 8, 32], strides = [1, 1, 1]} : vector<2x8x32xf32> to vector<1x8x32xf32>
    %310 = vector.shape_cast %309 : vector<1x8x32xf32> to vector<8x32xf32>
    %311 = arith.addf %228, %310 : vector<8x32xf32>
    %c0_79 = arith.constant 0 : index
    %c0_80 = arith.constant 0 : index
    %312 = vector.load %arg14[%c0_79, %c0_80] : memref<8x32xf32, #tpu.memory_space<vmem>>, vector<8x32xf32>
    tpu.vector_store %arg14[%c0_79, %c0_80], %311 {strides = array<i32>} : memref<8x32xf32, #tpu.memory_space<vmem>>, vector<8x32xf32>,
    %313 = vector.extract_strided_slice %308 {offsets = [1, 0, 0], sizes = [1, 8, 32], strides = [1, 1, 1]} : vector<2x8x32xf32> to vector<1x8x32xf32>
    %314 = vector.shape_cast %313 : vector<1x8x32xf32> to vector<8x32xf32>
    %315 = arith.addf %230, %314 : vector<8x32xf32>
    %c0_81 = arith.constant 0 : index
    %c0_82 = arith.constant 0 : index
    %316 = vector.load %arg15[%c0_81, %c0_82] : memref<8x32xf32, #tpu.memory_space<vmem>>, vector<8x32xf32>
    tpu.vector_store %arg15[%c0_81, %c0_82], %315 {strides = array<i32>} : memref<8x32xf32, #tpu.memory_space<vmem>>, vector<8x32xf32>,
    return
  }
  func.func @transform_0(%arg0: i32) -> (i32, i32) {
    %c0_i32 = arith.constant 0 : i32
    %c0_i32_0 = arith.constant 0 : i32
    return %arg0, %c0_i32 : i32, i32
  }
  func.func @transform_1(%arg0: i32) -> (i32, i32) {
    %c0_i32 = arith.constant 0 : i32
    %c0_i32_0 = arith.constant 0 : i32
    return %arg0, %c0_i32 : i32, i32
  }
  func.func @transform_2(%arg0: i32) -> (i32, i32, i32) {
    %c0_i32 = arith.constant 0 : i32
    %c0_i32_0 = arith.constant 0 : i32
    %c0_i32_1 = arith.constant 0 : i32
    return %arg0, %c0_i32, %c0_i32_0 : i32, i32, i32
  }
  func.func @transform_3(%arg0: i32) -> (i32, i32) {
    %c0_i32 = arith.constant 0 : i32
    %c0_i32_0 = arith.constant 0 : i32
    %c0_i32_1 = arith.constant 0 : i32
    return %c0_i32, %c0_i32_0 : i32, i32
  }
  func.func @transform_4(%arg0: i32) -> (i32, i32) {
    %c0_i32 = arith.constant 0 : i32
    %c0_i32_0 = arith.constant 0 : i32
    %c0_i32_1 = arith.constant 0 : i32
    return %c0_i32, %c0_i32_0 : i32, i32
  }
  func.func @transform_5(%arg0: i32) -> (i32, i32, i32) {
    %c0_i32 = arith.constant 0 : i32
    %c0_i32_0 = arith.constant 0 : i32
    %c0_i32_1 = arith.constant 0 : i32
    %c0_i32_2 = arith.constant 0 : i32
    return %c0_i32, %c0_i32_0, %c0_i32_1 : i32, i32, i32
  }
  func.func @transform_6(%arg0: i32) -> (i32, i32, i32) {
    %c0_i32 = arith.constant 0 : i32
    %c0_i32_0 = arith.constant 0 : i32
    %c0_i32_1 = arith.constant 0 : i32
    %c0_i32_2 = arith.constant 0 : i32
    return %c0_i32, %c0_i32_0, %c0_i32_1 : i32, i32, i32
  }
  func.func @transform_7(%arg0: i32) -> (i32, i32) {
    %c0_i32 = arith.constant 0 : i32
    %c0_i32_0 = arith.constant 0 : i32
    %c0_i32_1 = arith.constant 0 : i32
    return %c0_i32, %c0_i32_0 : i32, i32
  }
  func.func @transform_8(%arg0: i32) -> (i32, i32) {
    %c0_i32 = arith.constant 0 : i32
    %c0_i32_0 = arith.constant 0 : i32
    %c0_i32_1 = arith.constant 0 : i32
    return %c0_i32, %c0_i32_0 : i32, i32
  }
  func.func @transform_9(%arg0: i32) -> (i32, i32) {
    %c0_i32 = arith.constant 0 : i32
    %c0_i32_0 = arith.constant 0 : i32
    %c0_i32_1 = arith.constant 0 : i32
    return %c0_i32, %c0_i32_0 : i32, i32
  }
  func.func @transform_10(%arg0: i32) -> (i32, i32) {
    %c0_i32 = arith.constant 0 : i32
    %c0_i32_0 = arith.constant 0 : i32
    %c0_i32_1 = arith.constant 0 : i32
    return %c0_i32, %c0_i32_0 : i32, i32
  }
  func.func @transform_11(%arg0: i32) -> (i32, i32) {
    %c0_i32 = arith.constant 0 : i32
    %c0_i32_0 = arith.constant 0 : i32
    %c0_i32_1 = arith.constant 0 : i32
    return %c0_i32, %c0_i32_0 : i32, i32
  }
  func.func @transform_12(%arg0: i32) -> (i32, i32) {
    %c0_i32 = arith.constant 0 : i32
    %c0_i32_0 = arith.constant 0 : i32
    %c0_i32_1 = arith.constant 0 : i32
    return %c0_i32, %c0_i32_0 : i32, i32
  }
  func.func @transform_13(%arg0: i32) -> (i32, i32) {
    %c0_i32 = arith.constant 0 : i32
    %c0_i32_0 = arith.constant 0 : i32
    return %arg0, %c0_i32 : i32, i32
  }
  func.func @transform_14(%arg0: i32) -> (i32, i32) {
    %c0_i32 = arith.constant 0 : i32
    %c0_i32_0 = arith.constant 0 : i32
    return %arg0, %c0_i32 : i32, i32
  }
}

</mosaic_0001>

<bundles_post_ra>
// kernel: tpu_custom_call.1
= control target key start
LH: loop header
LB: loop body
LE: loop exit
PB: predicated region body
PF: predicated region fallthrough
CT: control target
= control target key end

     0   :  { %s2261_s0 = inlined_call_operand.vmem [shape: f32[16,32], index: 0, kind: input, shape index: {}]   ;;  %s2262_s1 = inlined_call_operand.vmem [shape: f32[16,32], index: 1, kind: input, shape index: {}]   ;;  %s2263_s2 = inlined_call_operand.vmem [shape: f32[2,8,8], index: 2, kind: input, shape index: {}]   ;;  %s2264_s3 = inlined_call_operand.vmem [shape: bf16[32,96], index: 3, kind: input, shape index: {}]   ;;  %s2265_s4 = inlined_call_operand.vmem [shape: bf16[32,32], index: 4, kind: input, shape index: {}]   ;;  %s2266_s5 = inlined_call_operand.vmem [shape: bf16[2,32,128], index: 5, kind: input, shape index: {}]   ;;  %s2267_s6 = inlined_call_operand.vmem [shape: bf16[2,128,32], index: 6, kind: input, shape index: {}]   ;;  %s2268_s7 = inlined_call_operand.vmem [shape: f32[1,96], index: 7, kind: input, shape index: {}]   ;;  %s2269_s8 = inlined_call_operand.vmem [shape: f32[1,32], index: 8, kind: input, shape index: {}]   ;;  %s2270_s9 = inlined_call_operand.vmem [shape: f32[2,32], index: 9, kind: input, shape index: {}]   ;;  %s2271_s10 = inlined_call_operand.vmem [shape: f32[8,32], index: 10, kind: input, shape index: {}]   ;;  %s2272_s11 = inlined_call_operand.vmem [shape: f32[2,128], index: 11, kind: input, shape index: {}]   ;;  %s2273_s12 = inlined_call_operand.vmem [shape: f32[2,32], index: 12, kind: input, shape index: {}]   ;;  %s2274_s13 = inlined_call_operand.hbm [shape: f32[16,32], index: 13, kind: output, shape index: {0}]   ;;  %s2275_s14 = inlined_call_operand.hbm [shape: f32[16,32], index: 14, kind: output, shape index: {1}]  }
   0x1   :  { %2282 = sst [smem:[#allocation9_spill]] %s2261_s0 }
   0x2   :  { %2283 = sst [smem:[#allocation10_spill]] %s2262_s1 }
   0x3   :  { %2284 = sst [smem:[#allocation11_spill]] %s2263_s2 }
   0x4   :  { %2285 = sst [smem:[#allocation12_spill]] %s2264_s3 }
   0x5   :  { %2286 = sst [smem:[#allocation13_spill]] %s2265_s4 }
   0x6   :  { %2287 = sst [smem:[#allocation14_spill]] %s2266_s5 }
   0x7   :  { %2288 = sst [smem:[#allocation15_spill]] %s2267_s6 }
   0x8   :  { %20 = vsyncpa [#allocation3], 0 }
   0x9   :  { %22 = vsyncpa [#allocation3 + $0x1], 0 }
   0xa   :  { %23 = vsyncpa [#allocation5], 0 }
   0xb   :  { %25 = vsyncpa [#allocation5 + $0x1], 0  ;;  %s1901_s29 = smov 0   ;;  %s1903_s30 = smov 0  }
   0xc   :  { %s1905_s15 = smov 0   ;;  %s1907_s16 = smov 0  }
   0xd LB: > { %s1922_s17 = sadd.s32 4294967295, %s1808_s16   ;;  %s1458_s18 = sadd.s32 4294967294, %s1808_s16   ;;  %s1808_s16 = sphi %s1907_s16, %s2308_s16   ;;  %s1804_s15 = sphi %s1905_s15, %s2307_s15   ;;  %s1800_s30 = sphi %s1903_s30, %s2306_s30   ;;  %s1796_s29 = sphi %s1901_s29, %s2305_s29  }
   0xe   : > { %s1926_s19 = sadd.s32 1, %s1808_s16   ;;  %s326_s20 = sadd.s32 1, %s1804_s15 }
   0xf   : > { %s323_s21 = ssub.s32 %s1808_s16, %s1926_s19  ;;  %p336_p0 = scmp.ne.s32.totalorder %s1804_s15, %s1800_s30 }
  0x10   : > { %p324_p1 = scmp.eq.s32.totalorder %s323_s21, 0  ;;  %p337_p2 = scmp.eq.s32.totalorder %s1922_s17, 1 }
  0x11   : > { %p342_p3 = scmp.ne.s32.totalorder %s1800_s30, %s1796_s29  ;;  %p343_p4 = scmp.eq.s32.totalorder %s1458_s18, 1 }
  0x12   : > { %s1937_s22 = scalar_select %p324_p1, %s1804_s15, %s326_s20  }
  0x13   : > { %p1939_p5 = por %p337_p2, %p336_p0  ;;  %p1943_p6 = por %p343_p4, %p342_p3 }
  0x14   : > { %2289 = sst [smem:[#allocation8_spill]] %s1937_s22  ;;  %p1461_p7 = scmp.ge.s32.totalorder %s1808_s16, 1 }
  0x15   : > { %p438_p8 = scmp.lt.s32.totalorder %s1808_s16, 3 }
  0x17   : > { %p439_p9 = pnand %p1461_p7, %p438_p8 }
  0x18   : > { %p496_p10 = scmp.lt.s32.totalorder (!%p439_p9), %s1922_s17, 1  ;;  %s2292_s0 = sld [smem:[#allocation9_spill]] (!%p439_p9) }
  0x19   : > { %442 = sbr.rel (%p439_p9) target bundleno = 2353 (0x931), region = 72  ;;  %s2293_s1 = sld [smem:[#allocation10_spill]] (!%p439_p9) }
  0x1a   : > { %s2294_s3 = sld [smem:[#allocation12_spill]] (!%p439_p9)  ;;  %s1812_s21 = smov (!%p439_p9), 104  }
  0x1b   : > { %s1814_s27 = smov (!%p439_p9), 72   ;;  %s2280_s28 = smov (!%p439_p9), 88  }
  0x1c   : > { %s2277_s20 = smov (!%p439_p9), 80   ;;  %s2295_s2 = sld [smem:[#allocation11_spill]] (!%p439_p9) }
  0x1d   : > { %s2300_s4 = sld [smem:[#allocation13_spill]] (!%p439_p9) }
  0x1e   : > { %s497_s25 = scalar_select %p496_p10, %s1922_s17, 1  ;;  %vm512_vm0 = vcmask 261120   ;;  %v1810_v4 = vmov 32.0   ;;  %v1988_v35 = vld [vmem:[%s2271_s10] sm:$0xff]  ;;  %vm627_vm8 = vcmask 64512   ;;  %vm648_vm9 = vcmask 130048  }
  0x1f   : > { %1684 = vrcp.f32 %v1810_v4  ;;  %v530_v39 = vperm.slane %v1988_v35, 0  ;;  %v556_v41 = vperm.slane %v1988_v35, 2  ;;  %v544_v48 = vperm.slane %v1988_v35, 1  ;;  %v1680_v55 = vld [vmem:[%s2268_s7] ss:$0 sm:$0xff]  ;;  %s2301_s5 = sld [smem:[#allocation14_spill]] }
  0x20   : > { %s1951_s26 = sshll.u32 %s497_s25, 3  ;;  %v1582_v21 = vld [vmem:[%s2294_s3 + $0x8] sm:$0xff]  ;;  %v1581_v22 = vld [vmem:[%s2294_s3] sm:$0xff]  ;;  %v570_v49 = vperm.slane %v1988_v35, 3  ;;  %s1811_s25 = smov 96   ;;  %vm685_vm11 = vcmask 1043456  }
  0x21   : > { %s499_s18 = scalar_lea.vmem %s2292_s0, %s1951_s26  ;;  %s503_s22 = scalar_lea.vmem %s2293_s1, %s1951_s26  ;;  %602 = vmatpush.bf16.msra.mxu1 %v1582_v21  ;;  %v1682_v58 = vld [vmem:[%s2270_s9 + $0x1] ss:$0 sm:$0xff]  ;;  %v1681_v61 = vld [vmem:[%s2270_s9] ss:$0 sm:$0xff]  ;;  %vm942_vm12 = vcmask 195584  }
  0x22   : > { %v1957_v0 = vld [vmem:[%s499_s18] sm:$0xff]  ;;  %s2278_s18 = smov 120   ;;  %s2302_s6 = sld [smem:[#allocation15_spill]] }
  0x23   : > { %v513_v1 = vsel %vm512_vm0, %v1957_v0, 0.0  ;;  %v1965_v2 = vld [vmem:[%s503_s22] sm:$0xff]  ;;  %s2276_s22 = smov 8  }
  0x24   : > { %514 = vadd.xlane.f32.xlu0 %v513_v1  ;;  %v546_v3 = vsel %vm512_vm0, %v1965_v2, 0.0 }
  0x25   : > { %v1685_v5 = vpop.eup %1684  ;;  %603 = vmatpush.bf16.msra.mxu1 %v1581_v22 }
  0x26   : > { %v517_v6 = vmul.f32 32.0, %v1685_v5  ;;  %vm521_vm1 = vweird.f32 %v1685_v5 }
  0x28   : > { %v518_v7 = vsub.f32 1.0, %v517_v6 }
  0x2a   : > { %v519_v8 = vmul.f32 %v1685_v5, %v518_v7 }
  0x2c   : > { %547 = vadd.xlane.f32.xlu0 %v546_v3  ;;  %v520_v9 = vadd.f32 %v1685_v5, %v519_v8 }
  0x2e   : > { %v1969_v10 = vsel %vm521_vm1, %v1685_v5, %v520_v9 }
  0x97   : > { %v515_v11 = vpop.xlane.xlu0 %514 }
  0x98   : > { %v523_v12 = vmul.f32 %v1969_v10, %v515_v11 }
  0x9a   : > { %v524_v13 = vsub.f32 %v1957_v0, %v523_v12 }
  0x9c   : > { %v525_v14 = vmul.f32 %v524_v13, %v524_v13  ;;  %v531_v44 = vmul.f32 %v530_v39, %v524_v13 }
  0x9e   : > { %v526_v15 = vsel %vm512_vm0, %v525_v14, 0.0 }
  0x9f   : > { %527 = vadd.xlane.f32.xlu1 %v526_v15  ;;  %v548_v16 = vpop.xlane.xlu0 %547 }
  0xa0   : > { %v549_v17 = vmul.f32 %v548_v16, %v1969_v10 }
  0xa2   : > { %v550_v18 = vsub.f32 %v1965_v2, %v549_v17  ;;  %v1819_v17 = vmov -1e+09  }
  0xa4   : > { %v551_v19 = vmul.f32 %v550_v18, %v550_v18  ;;  %v557_v46 = vmul.f32 %v556_v41, %v550_v18 }
  0xa6   : > { %v552_v20 = vsel %vm512_vm0, %v551_v19, 0.0 }
  0xa7   : > { %553 = vadd.xlane.f32.xlu1 %v552_v20 }
 0x112   : > { %v528_v23 = vpop.xlane.xlu1 %527 }
 0x113   : > { %v529_v24 = vmul.f32 %v528_v23, %v1969_v10 }
 0x115   : > { %v532_v25 = vadd.f32 1e-06, %v529_v24 }
 0x117   : > { %1686 = vrsqrt.f32 %v532_v25  ;;  %vm539_vm3 = vweird.f32 %v532_v25 }
 0x11a   : > { %v554_v26 = vpop.xlane.xlu1 %553 }
 0x11b   : > { %v555_v27 = vmul.f32 %v554_v26, %v1969_v10 }
 0x11d   : > { %v1687_v28 = vpop.eup %1686  ;;  %v558_v29 = vadd.f32 1e-06, %v555_v27 }
 0x11e   : > { %v534_v30 = vmul.f32 %v1687_v28, %v532_v25  ;;  %vm540_vm2 = vweird.f32 %v1687_v28 }
 0x11f   : > { %1688 = vrsqrt.f32 %v558_v29  ;;  %vm541_vm4 = vmor %vm539_vm3, %vm540_vm2  ;;  %vm565_vm6 = vweird.f32 %v558_v29 }
 0x120   : > { %v535_v31 = vmul.f32 %v1687_v28, %v534_v30 }
 0x122   : > { %v536_v32 = vmul.f32 0.5, %v535_v31 }
 0x124   : > { %v537_v33 = vsub.f32 1.5, %v536_v32 }
 0x125   : > { %v1689_v34 = vpop.eup %1688 }
 0x126   : > { %v560_v36 = vmul.f32 %v1689_v34, %v558_v29  ;;  %v538_v37 = vmul.f32 %v1687_v28, %v537_v33  ;;  %vm566_vm5 = vweird.f32 %v1689_v34 }
 0x127   : > { %vm567_vm7 = vmor %vm565_vm6, %vm566_vm5 }
 0x128   : > { %v561_v38 = vmul.f32 %v1689_v34, %v560_v36  ;;  %v542_v42 = vsel %vm541_vm4, %v1687_v28, %v538_v37 }
 0x129   : > { %v543_v47 = vmul.f32 %v542_v42, %v531_v44 }
 0x12a   : > { %v562_v40 = vmul.f32 0.5, %v561_v38 }
 0x12b   : > { %v545_v52 = vadd.f32 %v544_v48, %v543_v47 }
 0x12c   : > { %v563_v43 = vsub.f32 1.5, %v562_v40 }
 0x12e   : > { %v564_v45 = vmul.f32 %v1689_v34, %v563_v43 }
 0x130   : > { %v568_v50 = vsel %vm567_vm7, %v1689_v34, %v564_v45 }
 0x131   : > { %v569_v51 = vmul.f32 %v568_v50, %v557_v46 }
 0x133   : > { %v571_v53 = vadd.f32 %v570_v49, %v569_v51 }
 0x135   : > { %v572_v54 = vpack.c.bf16 %v571_v53, %v545_v52 }
 0x137   : > { %1475 = vmatmul.msk.bf16.vlgmr.msra.gmra.mxu1 %vm512_vm0, %v572_v54 }
 0x1b4   : > { %v605_v56 = vpop.f32.mrf.mxu1 }
 0x1b5   : > { %v1998_v57 = vadd.f32 %v1680_v55, %v605_v56 }
 0x1b7   : > { %631 = vrot.lane.b32.xlu2 %v1998_v57, %s1811_s25  ;;  %v617_v62 = vmul.f32 %v1682_v58, %v1998_v57  ;;  %v613_v4 = vmul.f32 %v1681_v61, %v1998_v57 }
 0x1bc   : > { %v607_v59 = vpop.f32.mrf.mxu1 }
 0x1bd   : > { %v2005_v60 = vadd.f32 %v1680_v55, %v607_v59 }
 0x1bf   : > { %635 = vrot.lane.b32.xlu2 %v2005_v60, %s1812_s21  ;;  %v618_v63 = vmul.f32 %v1681_v61, %v2005_v60  ;;  %v615_v3 = vmul.f32 %v1682_v58, %v2005_v60 }
 0x1c1   : > { %v2013_v1 = vadd.f32 %v618_v63, %v617_v62  ;;  %v616_v5 = vsub.f32 %v613_v4, %v615_v3 }
 0x1c3   : > { %624 = vrot.lane.b32.xlu0 %v2013_v1, %s2276_s22  ;;  %s1818_s22 = smov 112  }
 0x1cb   : > { %643 = vrot.lane.b32.xlu0 %v2005_v60, %s1814_s27 }
 0x1d3   : > { %708 = vrot.lane.b32.xlu0 %v1998_v57, %s2280_s28  ;;  %s1820_s28 = smov 64  }
 0x1db   : > { %703 = vrot.lane.b32.xlu0 %v616_v5, %s2278_s18  ;;  %s507_s18 = scalar_lea.vmem %s2295_s2, %s1951_s26  ;;  %s2296_s26 = smov 88  }
 0x1dc   : > { %v620_v15 = vld [vmem:[%s507_s18] sm:$0xff]  ;;  %s2297_s18 = smov 120  }
 0x1dd   : > { %vm621_vm10 = vcmp.gt.f32.partialorder %v620_v15, 0.0 }
 0x1de   : > { %v2034_v18 = vsel %vm621_vm10, 0.0, %v1819_v17 }
 0x1e3   : > { %852 = vrot.lane.b32.xlu0 %v616_v5, %s1812_s21  ;;  %s1824_s21 = smov 24  }
 0x1eb   : > { %784 = vrot.lane.b32.xlu0 %v1998_v57, %s2277_s20  ;;  %s1823_s20 = smov 48  }
 0x1f3   : > { %776 = vrot.lane.b32.xlu0 %v616_v5, %s1818_s22 }
 0x211   : > { %v632_v6 = vpop.permute.xlu2 %631 }
 0x219   : > { %v636_v7 = vpop.permute.xlu2 %635 }
 0x21a   : > { %v638_v8 = vsel %vm627_vm8, %v632_v6, %v636_v7 }
 0x21b   : > { %v639_v9 = vpack.c.bf16 %v638_v8, %v638_v8 }
 0x21d   : > { %v653_v11 = vsel %vm648_vm9, %v639_v9, 0 }
 0x21e   : > { %662 = vmatpush.bf16.xpose.msrb.mxu1 %v653_v11 }
 0x235   : > { %v625_v12 = vpop.permute.xlu0 %624 }
 0x236   : > { %v628_v13 = vsel %vm627_vm8, %v616_v5, %v625_v12 }
 0x237   : > { %v629_v14 = vpack.c.bf16 %v628_v13, %v628_v13 }
 0x239   : > { %1476 = vmatmul.msk.bf16.vlgmr.msrb.gmra.mxu1 %vm648_vm9, %v629_v14 }
 0x23d   : > { %v644_v28 = vpop.permute.xlu0 %643 }
 0x245   : > { %v709_v29 = vpop.permute.xlu0 %708 }
 0x24d   : > { %v704_v37 = vpop.permute.xlu0 %703 }
 0x24e   : > { %v706_v62 = vsel %vm627_vm8, %v704_v37, %v2013_v1 }
 0x24f   : > { %v707_v63 = vpack.c.bf16 %v706_v62, %v706_v62 }
 0x255   : > { %v853_v41 = vpop.permute.xlu0 %852 }
 0x25d   : > { %v785_v43 = vpop.permute.xlu0 %784 }
 0x265   : > { %v777_v48 = vpop.permute.xlu0 %776 }
 0x2b6   : > { %v664_v16 = vpop.f32.mrf.mxu1 }
 0x2b7   : > { %v668_v19 = vmul.f32 0.35355338, %v664_v16 }
 0x2b9   : > { %v669_v20 = vadd.f32 %v668_v19, %v2034_v18 }
 0x2bb   : > { %v670_v21 = vsel %vm627_vm8, %v669_v20, -inf }
 0x2bc   : > { %671 = vmax.xlane.f32.xlu1 %v670_v21 }
 0x2be   : > { %v666_v22 = vpop.f32.mrf.mxu1 }
 0x2d5   : > { %640 = vrot.lane.b32.xlu1 %v1998_v57, %s1820_s28 }
 0x2dd   : > { %711 = vrot.lane.b32.xlu1 %v2005_v60, %s1811_s25  ;;  %s2298_s25 = smov 80  }
 0x2e5   : > { %860 = vrot.lane.b32.xlu1 %v1998_v57, %s1814_s27  ;;  %s1822_s27 = smov 40  }
 0x2ed   : > { %855 = vrot.lane.b32.xlu1 %v2013_v1, %s1818_s22  ;;  %s1821_s22 = smov 56  }
 0x2f5   : > { %787 = vrot.lane.b32.xlu1 %v2005_v60, %s2296_s26  ;;  %s1825_s26 = smov 16  }
 0x2fd   : > { %779 = vrot.lane.b32.xlu1 %v2013_v1, %s2297_s18 }
 0x32f   : > { %v672_v23 = vpop.xlane.xlu1 %671 }
 0x330   : > { %v673_v24 = vsub.f32 %v669_v20, %v672_v23 }
 0x332   : > { %v674_v25 = vmul.f32 1.442695, %v673_v24 }
 0x334   : > { %1690 = vpow2.f32 %v674_v25 }
 0x33a   : > { %v1691_v26 = vpop.eup %1690 }
 0x33b   : > { %v676_v27 = vsel %vm627_vm8, %v1691_v26, 0.0 }
 0x33c   : > { %677 = vadd.xlane.f32.xlu2 %v676_v27 }
 0x347   : > { %v641_v30 = vpop.permute.xlu1 %640 }
 0x348   : > { %v646_v31 = vsel %vm627_vm8, %v641_v30, %v644_v28 }
 0x349   : > { %v647_v32 = vpack.c.bf16 %v646_v31, %v646_v31 }
 0x34b   : > { %v687_v33 = vsel %vm685_vm11, %v647_v32, 0 }
 0x34c   : > { %696 = vmatpush.bf16.msra.mxu3 %v687_v33 }
 0x34f   : > { %v712_v34 = vpop.permute.xlu1 %711 }
 0x350   : > { %v714_v36 = vsel %vm627_vm8, %v709_v29, %v712_v34 }
 0x351   : > { %v715_v38 = vpack.c.bf16 %v714_v36, %v714_v36 }
 0x353   : > { %v728_v39 = vsel %vm648_vm9, %v715_v38, 0  ;;  %v1665_v38 = vpack.i.bf16 %v1998_v57, %v2005_v60 }
 0x354   : > { %863 = vrot.lane.b32.xlu2 %v2005_v60, %s2298_s25  ;;  %737 = vmatpush.bf16.xpose.msrb.mxu3 %v728_v39 }
 0x357   : > { %v861_v40 = vpop.permute.xlu1 %860 }
 0x35f   : > { %v856_v42 = vpop.permute.xlu1 %855 }
 0x360   : > { %v858_v3 = vsel %vm627_vm8, %v853_v41, %v856_v42 }
 0x361   : > { %v859_v4 = vpack.c.bf16 %v858_v3, %v858_v3 }
 0x367   : > { %v788_v44 = vpop.permute.xlu1 %787 }
 0x368   : > { %v790_v45 = vsel %vm627_vm8, %v785_v43, %v788_v44 }
 0x369   : > { %v791_v46 = vpack.c.bf16 %v790_v45, %v790_v45 }
 0x36b   : > { %v804_v47 = vsel %vm648_vm9, %v791_v46, 0 }
 0x36c   : > { %813 = vmatpush.bf16.xpose.msra.mxu0 %v804_v47 }
 0x36f   : > { %v780_v49 = vpop.permute.xlu1 %779 }
 0x370   : > { %v782_v50 = vsel %vm627_vm8, %v777_v48, %v780_v49 }
 0x371   : > { %v783_v51 = vpack.c.bf16 %v782_v50, %v782_v50 }
 0x373   : > { %1480 = vmatmul.msk.bf16.vlgmr.msra.gmra.mxu0 %vm648_vm9, %v783_v51 }
 0x3af   : > { %v678_v52 = vpop.xlane.xlu2 %677 }
 0x3b0   : > { %1692 = vrcp.f32 %v678_v52 }
 0x3b6   : > { %v1693_v53 = vpop.eup %1692 }
 0x3b7   : > { %v864_v54 = vpop.permute.xlu2 %863  ;;  %v680_v55 = vmul.f32 %v1693_v53, %v1691_v26 }
 0x3b8   : > { %v866_v56 = vsel %vm627_vm8, %v861_v40, %v864_v54 }
 0x3b9   : > { %v867_v58 = vpack.c.bf16 %v866_v56, %v866_v56  ;;  %v681_v59 = vpack.c.bf16 %v680_v55, %v680_v55 }
 0x3bb   : > { %1477 = vmatmul.msk.bf16.vlgmr.msra.gmra.mxu3 %vm627_vm8, %v681_v59  ;;  %v880_v61 = vsel %vm648_vm9, %v867_v58, 0 }
 0x3bc   : > { %889 = vmatpush.bf16.xpose.msra.mxu3 %v880_v61 }
 0x3cb   : > { %1478 = vmatmul.msk.bf16.vlgmr.msrb.gmra.mxu3 %vm648_vm9, %v707_v63 }
 0x3db   : > { %1482 = vmatmul.msk.bf16.vlgmr.msra.gmra.mxu3 %vm648_vm9, %v859_v4 }
 0x3f0   : > { %v815_v5 = vpop.f32.mrf.mxu0 }
 0x3f1   : > { %v819_v6 = vmul.f32 0.35355338, %v815_v5 }
 0x3f3   : > { %v820_v7 = vadd.f32 %v819_v6, %v2034_v18 }
 0x3f5   : > { %v821_v8 = vsel %vm627_vm8, %v820_v7, -inf }
 0x3f6   : > { %822 = vmax.xlane.f32.xlu1 %v821_v8 }
 0x3f8   : > { %v817_v9 = vpop.f32.mrf.mxu0 }
 0x43e   : > { %v2070_v11 = vpop.f32.mrf.mxu3 }
 0x446   : > { %v700_v12 = vpop.f32.mrf.mxu3 }
 0x44e   : > { %v739_v1 = vpop.f32.mrf.mxu3 }
 0x44f   : > { %v743_v13 = vmul.f32 0.35355338, %v739_v1 }
 0x451   : > { %v744_v14 = vadd.f32 %v743_v13, %v2034_v18 }
 0x453   : > { %v745_v15 = vsel %vm627_vm8, %v744_v14, -inf }
 0x454   : > { %746 = vmax.xlane.f32.xlu2 %v745_v15  ;;  %v1584_v15 = vld [vmem:[%s2300_s4 + $0x8] sm:$0xff] }
 0x455   : > { %987 = vmatpush.bf16.msrb.mxu0 %v1584_v15  ;;  %v1033_v15 = vperm.slane %v1988_v35, 6 }
 0x456   : > { %v741_v16 = vpop.f32.mrf.mxu3 }
 0x457   : > { %v1583_v16 = vld [vmem:[%s2300_s4] sm:$0xff]  ;;  %s1734_s4 = scalar_lea.hbm %s2274_s13, 16 }
 0x459   : > { %988 = vmatpush.bf16.msrb.mxu0 %v1583_v16 }
 0x45e   : > { %v891_v17 = vpop.f32.mrf.mxu3 }
 0x45f   : > { %v895_v19 = vmul.f32 0.35355338, %v891_v17 }
 0x461   : > { %v896_v20 = vadd.f32 %v895_v19, %v2034_v18 }
 0x463   : > { %v897_v21 = vsel %vm627_vm8, %v896_v20, -inf }
 0x464   : > { %898 = vmax.xlane.f32.xlu0 %v897_v21 }
 0x466   : > { %v893_v22 = vpop.f32.mrf.mxu3 }
 0x469   : > { %v823_v23 = vpop.xlane.xlu1 %822 }
 0x46a   : > { %v824_v24 = vsub.f32 %v820_v7, %v823_v23 }
 0x46c   : > { %v825_v25 = vmul.f32 1.442695, %v824_v24 }
 0x46e   : > { %1694 = vpow2.f32 %v825_v25 }
 0x474   : > { %v1695_v26 = vpop.eup %1694 }
 0x475   : > { %v827_v27 = vsel %vm627_vm8, %v1695_v26, 0.0 }
 0x476   : > { %828 = vadd.xlane.f32.xlu1 %v827_v27 }
 0x478   : > { %716 = vrot.lane.b32.xlu0 %v1998_v57, %s1821_s22 }
 0x480   : > { %868 = vrot.lane.b32.xlu0 %v1998_v57, %s1822_s27 }
 0x488   : > { %795 = vrot.lane.b32.xlu0 %v2005_v60, %s1821_s22  ;;  %s2201_s22 = sand.u32 1, %s1800_s30  }
 0x490   : > { %945 = vrot.lane.b32.xlu0 %v2070_v11, %s2297_s18 }
 0x4c7   : > { %v747_v18 = vpop.xlane.xlu2 %746 }
 0x4c8   : > { %v748_v28 = vsub.f32 %v744_v14, %v747_v18 }
 0x4ca   : > { %v749_v29 = vmul.f32 1.442695, %v748_v28 }
 0x4cc   : > { %1696 = vpow2.f32 %v749_v29 }
 0x4d2   : > { %v1697_v30 = vpop.eup %1696 }
 0x4d3   : > { %v751_v31 = vsel %vm627_vm8, %v1697_v30, 0.0 }
 0x4d4   : > { %752 = vadd.xlane.f32.xlu2 %v751_v31 }
 0x4d7   : > { %v899_v32 = vpop.xlane.xlu0 %898 }
 0x4d8   : > { %v900_v33 = vsub.f32 %v896_v20, %v899_v32  ;;  %v1683_v32 = vld [vmem:[%s2269_s8] ss:$0 sm:$0xff] }
 0x4da   : > { %v901_v34 = vmul.f32 1.442695, %v900_v33 }
 0x4dc   : > { %1698 = vpow2.f32 %v901_v34 }
 0x4e2   : > { %v1699_v36 = vpop.eup %1698 }
 0x4e3   : > { %v903_v37 = vsel %vm627_vm8, %v1699_v36, 0.0 }
 0x4e4   : > { %904 = vadd.xlane.f32.xlu1 %v903_v37 }
 0x4e9   : > { %v829_v48 = vpop.xlane.xlu1 %828 }
 0x4ea   : > { %v717_v41 = vpop.permute.xlu0 %716 }
 0x4ec   : > { %719 = vrot.lane.b32.xlu2 %v2005_v60, %s1820_s28  ;;  %s2299_s28 = smov 8  }
 0x4f2   : > { %v869_v49 = vpop.permute.xlu0 %868 }
 0x4fa   : > { %v796_v54 = vpop.permute.xlu0 %795 }
 0x4fd   : > { %1666 = vrot.lane.b32.xlu1 %v1665_v38, %s1823_s20 }
 0x502   : > { %v946_v19 = vpop.permute.xlu0 %945 }
 0x547   : > { %v753_v39 = vpop.xlane.xlu2 %752 }
 0x548   : > { %1700 = vrcp.f32 %v753_v39 }
 0x549   : > { %1702 = vrcp.f32 %v829_v48 }
 0x54e   : > { %v1701_v40 = vpop.eup %1700 }
 0x54f   : > { %v720_v42 = vpop.permute.xlu2 %719  ;;  %v755_v45 = vmul.f32 %v1701_v40, %v1697_v30  ;;  %v1703_v60 = vpop.eup %1702 }
 0x550   : > { %v722_v43 = vsel %vm627_vm8, %v717_v41, %v720_v42  ;;  %v831_v58 = vmul.f32 %v1703_v60, %v1695_v26  ;;  %v1588_v60 = vld [vmem:[%s2301_s5 + $0x18] sm:$0xff] }
 0x551   : > { %v723_v44 = vpack.c.bf16 %v722_v43, %v722_v43  ;;  %v756_v47 = vpack.c.bf16 %v755_v45, %v755_v45  ;;  %1115 = vmatpush.bf16.msrb.mxu3 %v1588_v60 }
 0x552   : > { %v832_v4 = vpack.c.bf16 %v831_v58, %v831_v58 }
 0x553   : > { %v761_v46 = vsel %vm685_vm11, %v723_v44, 0 }
 0x554   : > { %770 = vmatpush.bf16.msra.mxu2 %v761_v46 }
 0x557   : > { %1479 = vmatmul.msk.bf16.vlgmr.msra.gmra.mxu2 %vm627_vm8, %v756_v47  ;;  %v905_v57 = vpop.xlane.xlu1 %904 }
 0x558   : > { %1704 = vrcp.f32 %v905_v57  ;;  %v1585_v57 = vld [vmem:[%s2301_s5] sm:$0xff] }
 0x55e   : > { %v1705_v51 = vpop.eup %1704 }
 0x55f   : > { %v907_v59 = vmul.f32 %v1705_v51, %v1699_v36  ;;  %v1587_v51 = vld [vmem:[%s2301_s5 + $0x10] sm:$0xff] }
 0x560   : > { %1116 = vmatpush.bf16.msrb.mxu3 %v1587_v51 }
 0x561   : > { %v908_v5 = vpack.c.bf16 %v907_v59, %v907_v59 }
 0x56f   : > { %v1667_v50 = vpop.permute.xlu1 %1666 }
 0x570   : > { %v1669_v52 = vunpack.i.h.bf16 %v1667_v50  ;;  %v1668_v53 = vunpack.i.l.bf16 %v1667_v50 }
 0x572   : > { %v798_v55 = vsel %vm627_vm8, %v1669_v52, %v796_v54  ;;  %v874_v56 = vsel %vm627_vm8, %v869_v49, %v1668_v53  ;;  %v1586_v49 = vld [vmem:[%s2301_s5 + $0x8] sm:$0xff]  ;;  %v1596_v54 = vld [vmem:[%s2302_s6 + $0x38] sm:$0xff] }
 0x573   : > { %v799_v61 = vpack.c.bf16 %v798_v55, %v798_v55  ;;  %v875_v62 = vpack.c.bf16 %v874_v56, %v874_v56  ;;  %v1595_v55 = vld [vmem:[%s2302_s6 + $0x30] sm:$0xff] }
 0x575   : > { %v837_v63 = vsel %vm685_vm11, %v799_v61, 0  ;;  %v913_v3 = vsel %vm685_vm11, %v875_v62, 0 }
 0x576   : > { %846 = vmatpush.bf16.msra.mxu1 %v837_v63  ;;  %922 = vmatpush.bf16.msrb.mxu2 %v913_v3 }
 0x579   : > { %1481 = vmatmul.msk.bf16.vlgmr.msra.gmra.mxu1 %vm627_vm8, %v832_v4  ;;  %1483 = vmatmul.msk.bf16.vlgmr.msrb.gmra.mxu2 %vm627_vm8, %v908_v5  ;;  %v1007_v4 = vperm.slane %v1988_v35, 4 }
 0x57a   : > { %1087 = vmatpush.bf16.msrb.mxu1 %v1586_v49  ;;  %1229 = vmatpush.bf16.msra.mxu2 %v1596_v54 }
 0x57e   : > { %1088 = vmatpush.bf16.msrb.mxu1 %v1585_v57  ;;  %1230 = vmatpush.bf16.msra.mxu2 %v1595_v55 }
 0x5da   : > { %v772_v6 = vpop.f32.mrf.mxu2 }
 0x5db   : > { %v954_v25 = vsel %vm627_vm8, %v946_v19, %v772_v6 }
 0x5e2   : > { %v774_v7 = vpop.f32.mrf.mxu2 }
 0x5f6   : > { %v848_v8 = vpop.f32.mrf.mxu1 }
 0x5f7   : > { %v1670_v9 = vpack.i.bf16 %v848_v8, %v772_v6 }
 0x5f9   : > { %1671 = vrot.lane.b32.xlu2 %v1670_v9, %s2299_s28  ;;  %s1577_s28 = sshll.u32 %s1922_s17, 3 }
 0x5fa   : > { %s1323_s25 = scalar_lea.hbm %s2274_s13, %s1577_s28  ;;  %s1337_s20 = scalar_lea.hbm %s2275_s14, %s1577_s28 }
 0x5fb   : > { %s1327_s2 = sshll.u32 %s1323_s25, 4  ;;  %s1328_s2 = int_to_ptr.hbm [resolvable:$true] %s1327_s2 }
 0x5fc   : > { %v924_v12 = vpop.f32.mrf.mxu2  ;;  %s1728_s18 = sshra.s32 %s1328_s2, 4  ;;  %s1729_s18 = int_to_ptr.hbm [resolvable:$true] %s1728_s18 }
 0x5fd   : > { %937 = vrot.lane.b32.xlu0 %v924_v12, %s1824_s21  ;;  %v1675_v13 = vpack.i.bf16 %v924_v12, %v848_v8  ;;  %v1021_v12 = vperm.slane %v1988_v35, 5  ;;  %s2281_s21 = sshll.u32 %s2201_s22, 3  ;;  %p1735_p0 = scmp.lt.s32.totalorder %s1729_s18, %s2274_s13 }
 0x5fe   : > { %v850_v1 = vpop.f32.mrf.mxu1  ;;  %s488_s0 = scalar_lea.vmem [#allocation2], %s2281_s21  ;;  %s1730_s21 = scalar_lea.hbm %s1729_s18, 8 }
 0x5ff   : > { %s1325_s1 = sshll.u32 %s488_s0, 4  ;;  %p1731_p11 = scmp.ne.s32.totalorder %s1729_s18, %s1730_s21  ;;  %s1326_s1 = int_to_ptr.vmem [resolvable:$true] %s1325_s1 }
 0x600   : > { %p1736_p1 = scmp.lt.s32.totalorder %s1734_s4, %s1730_s21 }
 0x601   : > { %1676 = vrot.lane.b32.xlu2 %v1675_v13, %s1825_s26  ;;  %s1308_s26 = scalar_lea.sflag [#allocation3], %s2201_s22  ;;  %p1732_p12 = pnand %p1731_p11, %p1939_p5 }
 0x602   : > { %p1737_p2 = por %p1736_p1, %p1735_p0 }
 0x603   : > { %p1733_p13 = pneg %p1732_p12 }
 0x604   : > { %v926_v14 = vpop.f32.mrf.mxu2 }
 0x605   : > { %p1738_p3 = pnand %p1737_p2, %p1733_p13 }
 0x653   : > { %v1672_v17 = vpop.permute.xlu2 %1671 }
 0x654   : > { %v1673_v21 = vunpack.i.l.bf16 %v1672_v17  ;;  %v1674_v22 = vunpack.i.h.bf16 %v1672_v17 }
 0x656   : > { %v940_v26 = vsel %vm627_vm8, %v2070_v11, %v1673_v21  ;;  %v955_v28 = vsel %vm648_vm9, %v954_v25, %v1674_v22  ;;  %v1047_v22 = vperm.slane %v1988_v35, 7  ;;  %v1604_v35 = vld [vmem:[%s2302_s6 + $0x78] sm:$0xff] }
 0x657   : > { %1290 = vmatpush.bf16.msra.mxu0 %v1604_v35 }
 0x65b   : > { %v1677_v20 = vpop.permute.xlu2 %1676 }
 0x65c   : > { %v1678_v23 = vunpack.i.l.bf16 %v1677_v20  ;;  %v1679_v24 = vunpack.i.h.bf16 %v1677_v20 }
 0x65e   : > { %v941_v18 = vsel %vm648_vm9, %v940_v26, %v1678_v23  ;;  %v956_v30 = vsel %vm942_vm12, %v955_v28, %v1679_v24  ;;  %v1592_v28 = vld [vmem:[%s2302_s6 + $0x18] sm:$0xff] }
 0x66f   : > { %v938_v27 = vpop.permute.xlu0 %937 }
 0x670   : > { %v943_v29 = vsel %vm942_vm12, %v941_v18, %v938_v27  ;;  %v1594_v27 = vld [vmem:[%s2302_s6 + $0x28] sm:$0xff]  ;;  %v1593_v18 = vld [vmem:[%s2302_s6 + $0x20] sm:$0xff] }
 0x671   : > { %v957_v31 = vpack.c.bf16 %v956_v30, %v943_v29  ;;  %1231 = vmatpush.bf16.msra.mxu2 %v1594_v27  ;;  %v1603_v29 = vld [vmem:[%s2302_s6 + $0x70] sm:$0xff] }
 0x672   : > { %1291 = vmatpush.bf16.msra.mxu0 %v1603_v29  ;;  %v1591_v30 = vld [vmem:[%s2302_s6 + $0x10] sm:$0xff] }
 0x673   : > { %1492 = vmatmul.msk.bf16.vlgmr.msrb.gmra.mxu0 %vm512_vm0, %v957_v31  ;;  %v1602_v31 = vld [vmem:[%s2302_s6 + $0x68] sm:$0xff] }
 0x675   : > { %1232 = vmatpush.bf16.msra.mxu2 %v1593_v18 }
 0x676   : > { %1292 = vmatpush.bf16.msra.mxu0 %v1602_v31 }
 0x679   : > { %1233 = vmatpush.bf16.msra.mxu2 %v1592_v28 }
 0x67d   : > { %1234 = vmatpush.bf16.msra.mxu2 %v1591_v30 }
 0x6f0   : > { %v990_v33 = vpop.f32.mrf.mxu0 }
 0x6f1   : > { %v991_v34 = vadd.f32 %v1683_v32, %v990_v33  ;;  %v1601_v33 = vld [vmem:[%s2302_s6 + $0x60] sm:$0xff] }
 0x6f2   : > { %1293 = vmatpush.bf16.msra.mxu0 %v1601_v33 }
 0x6f3   : > { %v2114_v36 = vadd.f32 %v991_v34, %v1957_v0  ;;  %v1589_v34 = vld [vmem:[%s2302_s6] sm:$0xff] }
 0x6f5   : > { %v997_v11 = vsel %vm512_vm0, %v2114_v36, 0.0 }
 0x6f6   : > { %998 = vadd.xlane.f32.xlu2 %v997_v11  ;;  %v1600_v11 = vld [vmem:[%s2302_s6 + $0x58] sm:$0xff] }
 0x6f7   : > { %1294 = vmatpush.bf16.msra.mxu0 %v1600_v11 }
 0x6f8   : > { %v992_v37 = vpop.f32.mrf.mxu0 }
 0x6f9   : > { %v993_v38 = vadd.f32 %v1683_v32, %v992_v37  ;;  %v1590_v32 = vld [vmem:[%s2302_s6 + $0x8] sm:$0xff]  ;;  %v1059_v37 = vld [vmem:[%s2272_s11] sm:$0x3] }
 0x6fa   : > { %1235 = vmatpush.bf16.msra.mxu2 %v1590_v32 }
 0x6fb   : > { %v2119_v39 = vadd.f32 %v993_v38, %v1965_v2  ;;  %v1599_v38 = vld [vmem:[%s2302_s6 + $0x50] sm:$0xff] }
 0x6fc   : > { %1295 = vmatpush.bf16.msra.mxu0 %v1599_v38 }
 0x6fd   : > { %v1023_v40 = vsel %vm512_vm0, %v2119_v39, 0.0 }
 0x6fe   : > { %1024 = vadd.xlane.f32.xlu1 %v1023_v40  ;;  %1236 = vmatpush.bf16.msra.mxu2 %v1589_v34  ;;  %v1062_v40 = vperm.slane %v1059_v37, 0 }
 0x769   : > { %v999_v41 = vpop.xlane.xlu2 %998 }
 0x76a   : > { %v1000_v42 = vmul.f32 %v999_v41, %v1969_v10  ;;  %v1598_v41 = vld [vmem:[%s2302_s6 + $0x48] sm:$0xff] }
 0x76b   : > { %1296 = vmatpush.bf16.msra.mxu0 %v1598_v41 }
 0x76c   : > { %v1001_v43 = vsub.f32 %v2114_v36, %v1000_v42 }
 0x76e   : > { %v1002_v0 = vmul.f32 %v1001_v43, %v1001_v43  ;;  %v1008_v9 = vmul.f32 %v1007_v4, %v1001_v43 }
 0x770   : > { %v1003_v44 = vsel %vm512_vm0, %v1002_v0, 0.0  ;;  %v1597_v0 = vld [vmem:[%s2302_s6 + $0x40] sm:$0xff] }
 0x771   : > { %v1025_v45 = vpop.xlane.xlu1 %1024  ;;  %1004 = vadd.xlane.f32.xlu0 %v1003_v44  ;;  %1297 = vmatpush.bf16.msra.mxu0 %v1597_v0 }
 0x772   : > { %v1026_v46 = vmul.f32 %v1025_v45, %v1969_v10 }
 0x774   : > { %v1027_v47 = vsub.f32 %v2119_v39, %v1026_v46 }
 0x776   : > { %v1028_v2 = vmul.f32 %v1027_v47, %v1027_v47  ;;  %v1034_v21 = vmul.f32 %v1033_v15, %v1027_v47  ;;  %v1061_v47 = vrot.slane %v1059_v37, 1 }
 0x778   : > { %v1029_v48 = vsel %vm512_vm0, %v1028_v2, 0.0  ;;  %v1063_v57 = vperm.slane %v1061_v47, 0 }
 0x779   : > { %1030 = vadd.xlane.f32.xlu2 %v1029_v48 }
 0x7e4   : > { %v1005_v50 = vpop.xlane.xlu0 %1004 }
 0x7e5   : > { %v1006_v52 = vmul.f32 %v1005_v50, %v1969_v10 }
 0x7e7   : > { %v1009_v53 = vadd.f32 1e-06, %v1006_v52 }
 0x7e9   : > { %1706 = vrsqrt.f32 %v1009_v53  ;;  %vm1016_vm14 = vweird.f32 %v1009_v53 }
 0x7ec   : > { %v1031_v56 = vpop.xlane.xlu2 %1030 }
 0x7ed   : > { %v1032_v58 = vmul.f32 %v1031_v56, %v1969_v10 }
 0x7ef   : > { %v1707_v59 = vpop.eup %1706  ;;  %v1035_v61 = vadd.f32 1e-06, %v1032_v58 }
 0x7f0   : > { %v1011_v62 = vmul.f32 %v1707_v59, %v1009_v53  ;;  %vm1017_vm13 = vweird.f32 %v1707_v59 }
 0x7f1   : > { %1708 = vrsqrt.f32 %v1035_v61  ;;  %vm1018_vm15 = vmor %vm1016_vm14, %vm1017_vm13  ;;  %vm1042_vm2 = vweird.f32 %v1035_v61 }
 0x7f2   : > { %v1012_v63 = vmul.f32 %v1707_v59, %v1011_v62 }
 0x7f4   : > { %v1013_v3 = vmul.f32 0.5, %v1012_v63 }
 0x7f6   : > { %v1014_v5 = vsub.f32 1.5, %v1013_v3 }
 0x7f7   : > { %v1709_v6 = vpop.eup %1708 }
 0x7f8   : > { %v1015_v7 = vmul.f32 %v1707_v59, %v1014_v5  ;;  %v1037_v8 = vmul.f32 %v1709_v6, %v1035_v61  ;;  %vm1043_vm1 = vweird.f32 %v1709_v6 }
 0x7f9   : > { %vm1044_vm3 = vmor %vm1042_vm2, %vm1043_vm1 }
 0x7fa   : > { %v1019_v10 = vsel %vm1018_vm15, %v1707_v59, %v1015_v7  ;;  %v1038_v1 = vmul.f32 %v1709_v6, %v1037_v8  ;;  %v1174_v8 = vld [vmem:[%s2273_s12] sm:$0x3] }
 0x7fb   : > { %v1020_v13 = vmul.f32 %v1019_v10, %v1008_v9  ;;  %v1177_v9 = vperm.slane %v1174_v8, 0 }
 0x7fc   : > { %v1039_v14 = vmul.f32 0.5, %v1038_v1  ;;  %v1176_v1 = vrot.slane %v1174_v8, 1 }
 0x7fd   : > { %v1022_v16 = vadd.f32 %v1021_v12, %v1020_v13 }
 0x7fe   : > { %v1040_v17 = vsub.f32 1.5, %v1039_v14  ;;  %v1178_v14 = vperm.slane %v1176_v1, 0 }
 0x7ff   : > { %v1049_v19 = vpack.c.bf16 %v1022_v16, %v1022_v16 }
 0x800   : > { %v1041_v20 = vmul.f32 %v1709_v6, %v1040_v17 }
 0x801   : > { %1501 = vmatmul.msk.bf16.vlgmr.msrb.gmra.mxu1 %vm512_vm0, %v1049_v19 }
 0x802   : > { %v1045_v23 = vsel %vm1044_vm3, %v1709_v6, %v1041_v20 }
 0x803   : > { %v1046_v24 = vmul.f32 %v1045_v23, %v1034_v21 }
 0x805   : > { %v1048_v25 = vadd.f32 %v1047_v22, %v1046_v24 }
 0x807   : > { %v1050_v26 = vpack.c.bf16 %v1048_v25, %v1048_v25 }
 0x809   : > { %1510 = vmatmul.msk.bf16.vlgmr.msrb.gmra.mxu3 %vm512_vm0, %v1050_v26 }
 0x87e   : > { %v1090_v42 = vpop.f32.mrf.mxu1 }
 0x87f   : > { %v1091_v43 = vadd.f32 %v1090_v42, %v1062_v40 }
 0x881   : > { %v1124_v44 = vmul.f32 %v1091_v43, %v1091_v43  ;;  %v1122_v54 = vmul.f32 0.5, %v1091_v43 }
 0x883   : > { %v1126_v45 = vmul.f32 %v1124_v44, %v1091_v43 }
 0x885   : > { %v1128_v46 = vmul.f32 0.044715, %v1126_v45 }
 0x886   : > { %v1092_v2 = vpop.f32.mrf.mxu1 }
 0x887   : > { %v1130_v48 = vadd.f32 %v1128_v46, %v1091_v43 }
 0x889   : > { %v1132_v49 = vmul.f32 0.7978846, %v1130_v48 }
 0x88b   : > { %1710 = vtanh.f32 %v1132_v49 }
 0x88c   : > { %v1118_v60 = vpop.f32.mrf.mxu3 }
 0x88d   : > { %v1119_v50 = vadd.f32 %v1118_v60, %v1063_v57 }
 0x88f   : > { %v1125_v51 = vmul.f32 %v1119_v50, %v1119_v50  ;;  %v1123_v4 = vmul.f32 0.5, %v1119_v50 }
 0x891   : > { %v1711_v52 = vpop.eup %1710  ;;  %v1127_v53 = vmul.f32 %v1125_v51, %v1119_v50 }
 0x892   : > { %v1136_v55 = vadd.f32 1.0, %v1711_v52 }
 0x893   : > { %v1129_v56 = vmul.f32 0.044715, %v1127_v53 }
 0x894   : > { %v1120_v58 = vpop.f32.mrf.mxu3  ;;  %v1138_v59 = vmul.f32 %v1136_v55, %v1122_v54 }
 0x895   : > { %v1131_v61 = vadd.f32 %v1129_v56, %v1119_v50 }
 0x896   : > { %v1140_v62 = vpack.c.bf16 %v1138_v59, %v1138_v59 }
 0x897   : > { %v1133_v63 = vmul.f32 0.7978846, %v1131_v61 }
 0x898   : > { %1237 = vmatmul.bf16.vlgmr.msra.gmra.mxu2 %v1140_v62 }
 0x899   : > { %1712 = vtanh.f32 %v1133_v63 }
 0x89f   : > { %v1713_v3 = vpop.eup %1712 }
 0x8a0   : > { %v1137_v5 = vadd.f32 1.0, %v1713_v3 }
 0x8a2   : > { %v1139_v6 = vmul.f32 %v1137_v5, %v1123_v4 }
 0x8a4   : > { %v1141_v7 = vpack.c.bf16 %v1139_v6, %v1139_v6 }
 0x8a6   : > { %1298 = vmatmul.bf16.vlgmr.msra.gmra.mxu0 %v1141_v7 }
 0x91b   : > { %v1238_v12 = vpop.f32.mrf.mxu2 }
 0x91c   : > { %v1239_v10 = vadd.f32 %v1238_v12, %v1177_v9 }
 0x91e   : > { %v1303_v13 = vadd.f32 %v1239_v10, %v2114_v36 }
 0x920   : > { %1304 = vst.msk [vmem:[%s488_s0] sm:$0xff] %vm512_vm0, %v1303_v13 }
 0x921   : > { %1741 = shalt.err (!%p1738_p3)
}
 0x922   : > { %1605 = dma.vmem_to_hbm [thread:$0]  (%p1939_p5), %s1326_s1, 128, %s1328_s2, %s1308_s26  }
 0x923   : > { %v1240_v36 = vpop.f32.mrf.mxu2  ;;  %v1299_v15 = vpop.f32.mrf.mxu0  ;;  %s2303_s28 = sshll.u32 %s2201_s22, 3  ;;  %s1341_s17 = sshll.u32 %s1337_s20, 4  ;;  %s1342_s17 = int_to_ptr.hbm [resolvable:$true] %s1341_s17 }
 0x924   : > { %s495_s0 = scalar_lea.vmem [#allocation4], %s2303_s28  ;;  %v1300_v16 = vadd.f32 %v1299_v15, %v1178_v14  ;;  %s1313_s4 = scalar_lea.sflag [#allocation5], %s2201_s22 }
 0x925   : > { %s1339_s3 = sshll.u32 %s495_s0, 4  ;;  %s1756_s5 = sshra.s32 %s1342_s17, 4  ;;  %s1340_s3 = int_to_ptr.vmem [resolvable:$true] %s1339_s3  ;;  %s1757_s5 = int_to_ptr.hbm [resolvable:$true] %s1756_s5 }
 0x926   : > { %v1305_v17 = vadd.f32 %v1300_v16, %v2119_v39  ;;  %s1758_s6 = scalar_lea.hbm %s1757_s5, 8  ;;  %s1762_s1 = scalar_lea.hbm %s2275_s14, 16 }
 0x927   : > { %p1759_p4 = scmp.ne.s32.totalorder %s1757_s5, %s1758_s6  ;;  %p1763_p9 = scmp.lt.s32.totalorder %s1757_s5, %s2275_s14 }
 0x928   : > { %1306 = vst.msk [vmem:[%s495_s0] sm:$0xff] %vm512_vm0, %v1305_v17  ;;  %p1764_p10 = scmp.lt.s32.totalorder %s1762_s1, %s1758_s6 }
 0x929   : > { %p1760_p7 = pnand %p1759_p4, %p1939_p5 }
 0x92a   : > { %p1765_p11 = por %p1764_p10, %p1763_p9 }
 0x92b   : > { %p1761_p8 = pneg %p1760_p7 }
 0x92d   : > { %p1766_p12 = pnand %p1765_p11, %p1761_p8 }
 0x92f   : > { %1769 = shalt.err (!%p1766_p12)
}
 0x930   : > { %1606 = dma.vmem_to_hbm [thread:$0]  (%p1939_p5), %s1340_s3, 128, %s1342_s17, %s1313_s4   ;;  %v1301_v39 = vpop.f32.mrf.mxu0 }
 0x931 PF: > { %p1616_p13 = scmp.ge.s32.totalorder %s1808_s16, 2  ;;  %s1353_s22 = sand.u32 1, %s1796_s29  }
 0x932   : > { %s1354_s26 = scalar_lea.sflag [#allocation3], %s1353_s22 }
 0x933   : > { %p1610_p0 = pnand %p1616_p13, %p1943_p6 }
 0x935   : > { %p1611_p1 = pneg %p1610_p0 }
 0x937   : > { %1787 = dma.done.wait (%p1611_p1), %s1354_s26, 128  }
 0x938   : > { %1789 = vsyncadd (%p1611_p1), %s1354_s26, 4294967168  ;;  %s1364_s18 = scalar_lea.sflag [#allocation5], %s1353_s22 }
 0x939   : > { %1791 = dma.done.wait (%p1611_p1), %s1364_s18, 128  }
 0x93a   : > { %1793 = vsyncadd (%p1611_p1), %s1364_s18, 4294967168  ;;  %s2304_s23 = sld [smem:[#allocation8_spill]]  ;;  %p28_p5 = scmp.ge.s32.totalorder %s1926_s19, 4  }
 0x93b   : > { %s2305_s29 = smov %s1800_s30  ;;  %s2306_s30 = smov %s1804_s15 }
 0x93c   : > { %s2308_s16 = smov %s1926_s19  ;;  %30 = sbr.rel (!%p28_p5) target bundleno = 13 (0xd), region = 130 }
 0x940   : > { %s2307_s15 = smov %s2304_s23 }
 0x941   :  { %1370 = vsyncpa [#allocation3], 1 }
 0x942   :  { %1372 = vsyncpa [#allocation3 + $0x1], 1 }
 0x943   :  { %1373 = vsyncpa [#allocation5], 1 }
 0x944   :  { %1375 = vsyncpa [#allocation5 + $0x1], 1 }

</bundles_post_ra>
